<compile_context>
chip_gen: v6e
topology: v6e:2x2x1
jax: 0.10.0
libtpu: 0.0.40
codegen_flags: <defaults>
</compile_context>

<pallas_src>
import jax
import jax.numpy as jnp
from jax.experimental import pallas as pl
from jax.experimental.pallas import tpu as pltpu

LANE = 128
SUBLANE = 8


def _round_up(n, m):
    return ((n + m - 1) // m) * m


def ann_kernel(x_ref, w1_ref, w2_ref, w3_ref, w4_ref, b_ref, o_ref):
    # fc1 + ReLU   (bf16 MXU inputs, f32 accumulate, f32 elementwise)
    h = jnp.dot(x_ref[...], w1_ref[...], preferred_element_type=jnp.float32)
    h = jnp.maximum(h + b_ref[0:1, :w1_ref.shape[1]], 0.0)

    # fc2 + ReLU
    h = jnp.dot(h.astype(jnp.bfloat16), w2_ref[...],
                preferred_element_type=jnp.float32)
    h = jnp.maximum(h + b_ref[1:2, :w2_ref.shape[1]], 0.0)

    # fc3 + ReLU
    h = jnp.dot(h.astype(jnp.bfloat16), w3_ref[...],
                preferred_element_type=jnp.float32)
    h = jnp.maximum(h + b_ref[2:3, :w3_ref.shape[1]], 0.0)

    # fc4 + sigmoid (exp and approx reciprocal both issue on the EUP slot)
    z = jnp.dot(h.astype(jnp.bfloat16), w4_ref[...],
                preferred_element_type=jnp.float32)
    z = z + b_ref[3:4, :w4_ref.shape[1]]
    o_ref[...] = pl.reciprocal(1.0 + jnp.exp(-z), approx=True).astype(o_ref.dtype)


def init_params(key, input_dim, hidden_dim, output_dim):
    """Deterministic synthetic params; shapes mirror the nn.Linear layers of ANNModel.
    Weights stored (in_features, out_features) so the kernel computes x @ W + b."""
    dims = [(input_dim, hidden_dim), (hidden_dim, 100), (100, 50), (50, output_dim)]
    params = {}
    for idx, (fan_in, fan_out) in enumerate(dims, start=1):
        key, kw, kb = jax.random.split(key, 3)
        bound = 1.0 / jnp.sqrt(fan_in)
        params[f"w{idx}"] = jax.random.uniform(
            kw, (fan_in, fan_out), jnp.float32, -bound, bound)
        params[f"b{idx}"] = jax.random.uniform(
            kb, (1, fan_out), jnp.float32, -bound, bound)
    return params


def prepare_params(params):
    """Pad feature dims up to 128-lane multiples (zero pad is inert through ReLU,
    sliced off at the output), cast weights to bf16 for the MXU, and pack the four
    biases into one f32 (4, max_fo_p) array."""
    weights, fo_pads = [], []
    for idx in range(1, 5):
        w = params[f"w{idx}"]
        fi, fo = w.shape
        fi_p, fo_p = _round_up(fi, LANE), _round_up(fo, LANE)
        weights.append(jnp.pad(w.astype(jnp.bfloat16),
                               ((0, fi_p - fi), (0, fo_p - fo))))
        fo_pads.append(fo_p)
    max_fo = max(fo_pads)
    bias_pack = jnp.stack([
        jnp.pad(params[f"b{idx}"][0], (0, max_fo - params[f"b{idx}"].shape[1]))
        for idx in range(1, 5)]).astype(jnp.float32)
    return {
        "weights": tuple(weights),
        "bias_pack": bias_pack,
        "input_dim": params["w1"].shape[0],
        "output_dim": params["w4"].shape[1],
    }


def _default_tb(batch):
    """Single grid step on single-TC chips (v5e/v6e); 2 steps on dual-TC v7x.
    Capped so per-step VMEM (~3 KiB/row) stays well under v7x's 64 MiB VMEM."""
    kind = jax.devices()[0].device_kind.lower()
    dual_tc = ("v7" in kind) or ("7x" in kind)
    n_steps = 2 if (dual_tc and batch >= 2 * SUBLANE) else 1
    tb = _round_up(pl.cdiv(batch, n_steps), SUBLANE)
    return min(tb, 4096)


def ann_forward(x, prep, *, tb=None):
    """x: (B, input_dim) f32.  prep: output of prepare_params.  Returns (B, output_dim) bf16."""
    B, din = x.shape
    w1, w2, w3, w4 = prep["weights"]
    bias_pack = prep["bias_pack"]
    din_p = w1.shape[0]
    dout = prep["output_dim"]
    dout_p = w4.shape[1]

    if tb is None:
        tb = _default_tb(B)
    assert tb % SUBLANE == 0, "batch tile must be a sublane multiple"

    # Only the feature (K) dim needs zero padding; ragged batch tiles are handled
    # by the grid (sublane-masked stores, still lane-dense).
    x_p = jnp.pad(x.astype(jnp.bfloat16), ((0, 0), (0, din_p - din)))

    full = lambda arr: pl.BlockSpec(arr.shape, lambda i: (0, 0))

    flops = 2 * B * (w1.shape[0] * w1.shape[1] + w2.shape[0] * w2.shape[1]
                     + w3.shape[0] * w3.shape[1] + w4.shape[0] * w4.shape[1])
    bytes_accessed = (x_p.size * 2
                      + sum(w.size for w in (w1, w2, w3, w4)) * 2
                      + bias_pack.size * 4
                      + B * dout_p * 2)

    out = pl.pallas_call(
        ann_kernel,
        out_shape=jax.ShapeDtypeStruct((B, dout_p), jnp.bfloat16),
        grid_spec=pltpu.PrefetchScalarGridSpec(
            num_scalar_prefetch=0,
            grid=(pl.cdiv(B, tb),),
            in_specs=[
                pl.BlockSpec((tb, din_p), lambda i: (i, 0)),   # x tiled over batch
                full(w1), full(w2), full(w3), full(w4),
                full(bias_pack),
            ],
            out_specs=pl.BlockSpec((tb, dout_p), lambda i: (i, 0)),
        ),
        compiler_params=pltpu.CompilerParams(
            dimension_semantics=("parallel",)),
        cost_estimate=pl.CostEstimate(
            flops=flops,
            transcendentals=2 * B * dout_p,
            bytes_accessed=bytes_accessed),
    )(x_p, w1, w2, w3, w4, bias_pack)

    # Padded columns beyond output_dim hold sigmoid(0)=0.5 — always slice them off.
    return out[:, :dout]


def ann_reference(x, p):
    """Pure-JAX f32 reference matching the PyTorch forward."""
    h = jnp.maximum(x @ p["w1"] + p["b1"], 0.0)
    h = jnp.maximum(h @ p["w2"] + p["b2"], 0.0)
    h = jnp.maximum(h @ p["w3"] + p["b3"], 0.0)
    return jax.nn.sigmoid(h @ p["w4"] + p["b4"])


if __name__ == "__main__":
    key = jax.random.PRNGKey(0)
    batch, input_dim, hidden_dim, output_dim = 200, 64, 32, 2

    key, kx = jax.random.split(key)
    x = jax.random.normal(kx, (batch, input_dim), jnp.float32)
    params = init_params(key, input_dim, hidden_dim, output_dim)
    prep = prepare_params(params)

    out = ann_forward(x, prep)
    out = jax.block_until_ready(out)

    ref = ann_reference(x, params)
    assert out.shape == (batch, output_dim)
    # bf16 MXU inputs, bf16 output, approx reciprocal => bf16-level tolerance.
    assert jnp.allclose(out.astype(jnp.float32), ref, atol=2e-2, rtol=2e-2), \
        "mismatch vs reference"
    print("KERNEL_OK")
</pallas_src>

<mosaic_0001>
module attributes {stable_mosaic.version = 11 : i64} {
  func.func @ann_kernel(%arg0: i32, %arg1: memref<200x128xbf16, #tpu.memory_space<vmem>>, %arg2: memref<128x128xbf16, #tpu.memory_space<vmem>>, %arg3: memref<128x128xbf16, #tpu.memory_space<vmem>>, %arg4: memref<128x128xbf16, #tpu.memory_space<vmem>>, %arg5: memref<128x128xbf16, #tpu.memory_space<vmem>>, %arg6: memref<4x128xf32, #tpu.memory_space<vmem>>, %arg7: memref<200x128xbf16, #tpu.memory_space<vmem>>) attributes {dimension_semantics = [#tpu.dimension_semantics<parallel>], iteration_bounds = array<i64: 1>, scalar_prefetch = 0 : i64, scratch_operands = 0 : i64, tpu.core_type = #tpu.core_type<tc>, window_params = [{transform_indices = @transform_0, window_bounds = array<i64: 200, 128>}, {pipeline_mode = #tpu.pipeline_mode<synchronous>, transform_indices = @transform_1, window_bounds = array<i64: 128, 128>}, {pipeline_mode = #tpu.pipeline_mode<synchronous>, transform_indices = @transform_2, window_bounds = array<i64: 128, 128>}, {pipeline_mode = #tpu.pipeline_mode<synchronous>, transform_indices = @transform_3, window_bounds = array<i64: 128, 128>}, {pipeline_mode = #tpu.pipeline_mode<synchronous>, transform_indices = @transform_4, window_bounds = array<i64: 128, 128>}, {pipeline_mode = #tpu.pipeline_mode<synchronous>, transform_indices = @transform_5, window_bounds = array<i64: 4, 128>}, {transform_indices = @transform_6, window_bounds = array<i64: 200, 128>}]} {
    %c0 = arith.constant 0 : index
    %c0_0 = arith.constant 0 : index
    %0 = vector.load %arg1[%c0, %c0_0] : memref<200x128xbf16, #tpu.memory_space<vmem>>, vector<200x128xbf16>
    %c0_1 = arith.constant 0 : index
    %c0_2 = arith.constant 0 : index
    %1 = vector.load %arg2[%c0_1, %c0_2] : memref<128x128xbf16, #tpu.memory_space<vmem>>, vector<128x128xbf16>
    %cst = arith.constant dense<0.000000e+00> : vector<200x128xf32>
    %2 = tpu.matmul %0, %1, %cst {dimension_numbers = #tpu.dot_dimension_numbers<[1], [0], [0], [1], [0, 0, 1, 1], [], []>} : vector<200x128xbf16>, vector<128x128xbf16>, vector<200x128xf32> -> vector<200x128xf32>
    %c0_3 = arith.constant 0 : index
    %c0_4 = arith.constant 0 : index
    %3 = vector.load %arg6[%c0_3, %c0_4] : memref<4x128xf32, #tpu.memory_space<vmem>>, vector<1x128xf32>
    %4 = vector.broadcast %3 : vector<1x128xf32> to vector<200x128xf32>
    %5 = arith.addf %2, %4 : vector<200x128xf32>
    %cst_5 = arith.constant 0.000000e+00 : f32
    %6 = vector.broadcast %cst_5 : f32 to vector<200x128xf32>
    %7 = arith.maximumf %5, %6 : vector<200x128xf32>
    %8 = arith.truncf %7 : vector<200x128xf32> to vector<200x128xbf16>
    %c0_6 = arith.constant 0 : index
    %c0_7 = arith.constant 0 : index
    %9 = vector.load %arg3[%c0_6, %c0_7] : memref<128x128xbf16, #tpu.memory_space<vmem>>, vector<128x128xbf16>
    %cst_8 = arith.constant dense<0.000000e+00> : vector<200x128xf32>
    %10 = tpu.matmul %8, %9, %cst_8 {dimension_numbers = #tpu.dot_dimension_numbers<[1], [0], [0], [1], [0, 0, 1, 1], [], []>} : vector<200x128xbf16>, vector<128x128xbf16>, vector<200x128xf32> -> vector<200x128xf32>
    %c1 = arith.constant 1 : index
    %c0_9 = arith.constant 0 : index
    %11 = vector.load %arg6[%c1, %c0_9] : memref<4x128xf32, #tpu.memory_space<vmem>>, vector<1x128xf32>
    %12 = vector.broadcast %11 : vector<1x128xf32> to vector<200x128xf32>
    %13 = arith.addf %10, %12 : vector<200x128xf32>
    %cst_10 = arith.constant 0.000000e+00 : f32
    %14 = vector.broadcast %cst_10 : f32 to vector<200x128xf32>
    %15 = arith.maximumf %13, %14 : vector<200x128xf32>
    %16 = arith.truncf %15 : vector<200x128xf32> to vector<200x128xbf16>
    %c0_11 = arith.constant 0 : index
    %c0_12 = arith.constant 0 : index
    %17 = vector.load %arg4[%c0_11, %c0_12] : memref<128x128xbf16, #tpu.memory_space<vmem>>, vector<128x128xbf16>
    %cst_13 = arith.constant dense<0.000000e+00> : vector<200x128xf32>
    %18 = tpu.matmul %16, %17, %cst_13 {dimension_numbers = #tpu.dot_dimension_numbers<[1], [0], [0], [1], [0, 0, 1, 1], [], []>} : vector<200x128xbf16>, vector<128x128xbf16>, vector<200x128xf32> -> vector<200x128xf32>
    %c2 = arith.constant 2 : index
    %c0_14 = arith.constant 0 : index
    %19 = vector.load %arg6[%c2, %c0_14] : memref<4x128xf32, #tpu.memory_space<vmem>>, vector<1x128xf32>
    %20 = vector.broadcast %19 : vector<1x128xf32> to vector<200x128xf32>
    %21 = arith.addf %18, %20 : vector<200x128xf32>
    %cst_15 = arith.constant 0.000000e+00 : f32
    %22 = vector.broadcast %cst_15 : f32 to vector<200x128xf32>
    %23 = arith.maximumf %21, %22 : vector<200x128xf32>
    %24 = arith.truncf %23 : vector<200x128xf32> to vector<200x128xbf16>
    %c0_16 = arith.constant 0 : index
    %c0_17 = arith.constant 0 : index
    %25 = vector.load %arg5[%c0_16, %c0_17] : memref<128x128xbf16, #tpu.memory_space<vmem>>, vector<128x128xbf16>
    %cst_18 = arith.constant dense<0.000000e+00> : vector<200x128xf32>
    %26 = tpu.matmul %24, %25, %cst_18 {dimension_numbers = #tpu.dot_dimension_numbers<[1], [0], [0], [1], [0, 0, 1, 1], [], []>} : vector<200x128xbf16>, vector<128x128xbf16>, vector<200x128xf32> -> vector<200x128xf32>
    %c3 = arith.constant 3 : index
    %c0_19 = arith.constant 0 : index
    %27 = vector.load %arg6[%c3, %c0_19] : memref<4x128xf32, #tpu.memory_space<vmem>>, vector<1x128xf32>
    %28 = vector.broadcast %27 : vector<1x128xf32> to vector<200x128xf32>
    %29 = arith.addf %26, %28 : vector<200x128xf32>
    %cst_20 = arith.constant 0.000000e+00 : f32
    %30 = vector.broadcast %cst_20 : f32 to vector<200x128xf32>
    %31 = arith.subf %30, %29 : vector<200x128xf32>
    %32 = math.exp %31 : vector<200x128xf32>
    %cst_21 = arith.constant 1.000000e+00 : f32
    %33 = vector.broadcast %cst_21 : f32 to vector<200x128xf32>
    %34 = arith.addf %33, %32 : vector<200x128xf32>
    %35 = tpu.reciprocal %34 {approx = true} : vector<200x128xf32> -> vector<200x128xf32>
    %36 = arith.truncf %35 : vector<200x128xf32> to vector<200x128xbf16>
    %c0_22 = arith.constant 0 : index
    %c0_23 = arith.constant 0 : index
    %37 = vector.load %arg7[%c0_22, %c0_23] : memref<200x128xbf16, #tpu.memory_space<vmem>>, vector<200x128xbf16>
    tpu.vector_store %arg7[%c0_22, %c0_23], %36 {strides = array<i32>} : memref<200x128xbf16, #tpu.memory_space<vmem>>, vector<200x128xbf16>,
    return
  }
  func.func @transform_0(%arg0: i32) -> (i32, i32) {
    %c0_i32 = arith.constant 0 : i32
    %c0_i32_0 = arith.constant 0 : i32
    return %arg0, %c0_i32 : i32, i32
  }
  func.func @transform_1(%arg0: i32) -> (i32, i32) {
    %c0_i32 = arith.constant 0 : i32
    %c0_i32_0 = arith.constant 0 : i32
    %c0_i32_1 = arith.constant 0 : i32
    return %c0_i32, %c0_i32_0 : i32, i32
  }
  func.func @transform_2(%arg0: i32) -> (i32, i32) {
    %c0_i32 = arith.constant 0 : i32
    %c0_i32_0 = arith.constant 0 : i32
    %c0_i32_1 = arith.constant 0 : i32
    return %c0_i32, %c0_i32_0 : i32, i32
  }
  func.func @transform_3(%arg0: i32) -> (i32, i32) {
    %c0_i32 = arith.constant 0 : i32
    %c0_i32_0 = arith.constant 0 : i32
    %c0_i32_1 = arith.constant 0 : i32
    return %c0_i32, %c0_i32_0 : i32, i32
  }
  func.func @transform_4(%arg0: i32) -> (i32, i32) {
    %c0_i32 = arith.constant 0 : i32
    %c0_i32_0 = arith.constant 0 : i32
    %c0_i32_1 = arith.constant 0 : i32
    return %c0_i32, %c0_i32_0 : i32, i32
  }
  func.func @transform_5(%arg0: i32) -> (i32, i32) {
    %c0_i32 = arith.constant 0 : i32
    %c0_i32_0 = arith.constant 0 : i32
    %c0_i32_1 = arith.constant 0 : i32
    return %c0_i32, %c0_i32_0 : i32, i32
  }
  func.func @transform_6(%arg0: i32) -> (i32, i32) {
    %c0_i32 = arith.constant 0 : i32
    %c0_i32_0 = arith.constant 0 : i32
    return %arg0, %c0_i32 : i32, i32
  }
}

</mosaic_0001>

<bundles_post_ra>
// kernel: tpu_custom_call.1
= control target key start
LH: loop header
LB: loop body
LE: loop exit
PB: predicated region body
PF: predicated region fallthrough
CT: control target
= control target key end

     0   :  { %11 = vsyncpa [#allocation3], 0  ;;  %s2544_s0 = inlined_call_operand.hbm [shape: bf16[200,128], index: 0, kind: input, shape index: {}]   ;;  %s2545_s1 = inlined_call_operand.hbm [shape: bf16[128,128], index: 1, kind: input, shape index: {}]   ;;  %s2546_s2 = inlined_call_operand.hbm [shape: bf16[128,128], index: 2, kind: input, shape index: {}]   ;;  %s2547_s3 = inlined_call_operand.hbm [shape: bf16[128,128], index: 3, kind: input, shape index: {}]   ;;  %s2548_s4 = inlined_call_operand.hbm [shape: bf16[128,128], index: 4, kind: input, shape index: {}]   ;;  %s2549_s5 = inlined_call_operand.vmem [shape: f32[4,128], index: 5, kind: input, shape index: {}]   ;;  %s2550_s6 = inlined_call_operand.hbm [shape: bf16[200,128], index: 6, kind: output, shape index: {}]  }
   0x1   :  { %12 = vsyncpa [#allocation6], 0 }
   0x2   :  { %13 = vsyncpa [#allocation9], 0 }
   0x3   :  { %14 = vsyncpa [#allocation4], 0  ;;  %s2207_s21 = smov [#allocation5]   ;;  %s2208_s23 = smov [#allocation8]  }
   0x4   :  { %s32_s22 = sshll.u32 %s2207_s21, 4  ;;  %s56_s24 = sshll.u32 %s2208_s23, 4  ;;  %s33_s22 = int_to_ptr.vmem [resolvable:$true] %s32_s22  ;;  %s57_s24 = int_to_ptr.vmem [resolvable:$true] %s56_s24 }
   0x5   :  { %s2087_s25 = scalar_lea.vmem %s33_s22, 1024  ;;  %p2092_p1 = scmp.lt.s32.totalorder %s33_s22, %s33_s22 }
   0x6   :  { %p2088_p0 = scmp.ne.s32.totalorder %s33_s22, %s2087_s25  ;;  %p2093_p2 = scmp.lt.s32.totalorder %s2087_s25, %s2087_s25 }
   0x8   :  { %p2094_p3 = por %p2093_p2, %p2092_p1 }
   0xa   :  { %p2095_p4 = pnand %p2094_p3, %p2088_p0 }
   0xc   :  { %2098 = shalt.err (!%p2095_p4)
}
   0xd   :  { %s2209_s26 = smov 64   ;;  %s2210_s27 = smov 4  }
   0xe   :  { %38 = dma.hbm_to_vmem [thread:$0]  %s2545_s1, 1024, %s33_s22, [#allocation6], %s2209_s26, %s2209_s26, %s2210_s27  }
   0xf   :  { %s2107_s30 = scalar_lea.vmem %s57_s24, 1024  ;;  %p2112_p6 = scmp.lt.s32.totalorder %s57_s24, %s57_s24 }
  0x10   :  { %p2108_p5 = scmp.ne.s32.totalorder %s57_s24, %s2107_s30  ;;  %p2113_p7 = scmp.lt.s32.totalorder %s2107_s30, %s2107_s30 }
  0x12   :  { %p2114_p8 = por %p2113_p7, %p2112_p6 }
  0x14   :  { %p2115_p9 = pnand %p2114_p8, %p2108_p5 }
  0x16   :  { %2118 = shalt.err (!%p2115_p9)
}
  0x17   :  { %62 = dma.hbm_to_vmem [thread:$0]  %s2547_s3, 1024, %s57_s24, [#allocation9], %s2209_s26, %s2209_s26, %s2210_s27  }
  0x18   :  { %s2211_s9 = smov [#allocation2]   ;;  %s2212_s11 = smov [#allocation7]  }
  0x19   :  { %s20_s10 = sshll.u32 %s2211_s9, 4  ;;  %s44_s12 = sshll.u32 %s2212_s11, 4  ;;  %s21_s10 = int_to_ptr.vmem [resolvable:$true] %s20_s10  ;;  %s45_s12 = int_to_ptr.vmem [resolvable:$true] %s44_s12 }
  0x1a   :  { %s2127_s1 = scalar_lea.vmem %s21_s10, 1600  ;;  %p2132_p11 = scmp.lt.s32.totalorder %s21_s10, %s21_s10 }
  0x1b   :  { %p2128_p10 = scmp.ne.s32.totalorder %s21_s10, %s2127_s1  ;;  %p2133_p12 = scmp.lt.s32.totalorder %s2127_s1, %s2127_s1 }
  0x1d   :  { %p2134_p13 = por %p2133_p12, %p2132_p11 }
  0x1f   :  { %p2135_p0 = pnand %p2134_p13, %p2128_p10 }
  0x21   :  { %2138 = shalt.err (!%p2135_p0)
}
  0x22   :  { %26 = dma.hbm_to_vmem [thread:$0]  %s2544_s0, 1600, %s21_s10, [#allocation3], %s2209_s26, %s2209_s26, %s2210_s27  }
  0x23   :  { %s2147_s3 = scalar_lea.vmem %s45_s12, 1024  ;;  %p2152_p2 = scmp.lt.s32.totalorder %s45_s12, %s45_s12 }
  0x24   :  { %p2148_p1 = scmp.ne.s32.totalorder %s45_s12, %s2147_s3  ;;  %p2153_p3 = scmp.lt.s32.totalorder %s2147_s3, %s2147_s3 }
  0x26   :  { %p2154_p4 = por %p2153_p3, %p2152_p2 }
  0x28   :  { %p2155_p5 = pnand %p2154_p4, %p2148_p1 }
  0x2a   :  { %2158 = shalt.err (!%p2155_p5)
}
  0x2b   :  { %50 = dma.hbm_to_vmem [thread:$0]  %s2546_s2, 1024, %s45_s12, [#allocation6], %s2209_s26, %s2209_s26, %s2210_s27  }
  0x2c   :  { %s2213_s17 = smov [#allocation10]  }
  0x2d   :  { %s68_s18 = sshll.u32 %s2213_s17, 4  ;;  %s69_s18 = int_to_ptr.vmem [resolvable:$true] %s68_s18 }
  0x2e   :  { %s2167_s19 = scalar_lea.vmem %s69_s18, 1024  ;;  %p2172_p7 = scmp.lt.s32.totalorder %s69_s18, %s69_s18 }
  0x2f   :  { %p2168_p6 = scmp.ne.s32.totalorder %s69_s18, %s2167_s19  ;;  %p2173_p8 = scmp.lt.s32.totalorder %s2167_s19, %s2167_s19 }
  0x31   :  { %p2174_p9 = por %p2173_p8, %p2172_p7 }
  0x33   :  { %p2175_p10 = pnand %p2174_p9, %p2168_p6 }
  0x35   :  { %2178 = shalt.err (!%p2175_p10)
}
  0x36   :  { %74 = dma.hbm_to_vmem [thread:$0]  %s2548_s4, 1024, %s69_s18, [#allocation9], %s2209_s26, %s2209_s26, %s2210_s27  }
  0x37   :  { %2199 = dma.done.wait [#allocation3], 1600  }
  0x38   :  { %2200 = vsyncadd [#allocation3], 4294965696 }
  0x39   :  { %2201 = dma.done.wait [#allocation6], 2048  }
  0x3a   :  { %2202 = vsyncadd [#allocation6], 4294965248 }
  0x3b   :  { %2203 = dma.done.wait [#allocation9], 2048  }
  0x3c   :  { %2204 = vsyncadd [#allocation9], 4294965248  ;;  %v2214_v0 = vmov 0.0   ;;  %vm2215_vm0 = vmmov 0   ;;  %v1934_v1 = vld [vmem:[#allocation5 + $0x38] sm:$0xff]   ;;  %v1935_v2 = vld [vmem:[#allocation5 + $0x30] sm:$0xff]  }
  0x3d   :  { %1652 = vmatprep.subr.bf16.mxu0 %v2214_v0  ;;  %1668 = vmatprep.mubr.msk.bf16.mxu0 %vm2215_vm0, %v2214_v0  ;;  %v1936_v3 = vld [vmem:[#allocation5 + $0x28] sm:$0xff]   ;;  %v1937_v4 = vld [vmem:[#allocation5 + $0x20] sm:$0xff]   ;;  %v1938_v5 = vld [vmem:[#allocation5 + $0x18] sm:$0xff]  }
  0x3e   :  { %1720 = vmatprep.subr.bf16.mxu1 %v2214_v0  ;;  %1736 = vmatprep.mubr.msk.bf16.mxu1 %vm2215_vm0, %v2214_v0  ;;  %v1939_v6 = vld [vmem:[#allocation5 + $0x10] sm:$0xff]   ;;  %v1955_v7 = vld [vmem:[#allocation7 + $0x38] sm:$0xff]   ;;  %v1940_v8 = vld [vmem:[#allocation5 + $0x8] sm:$0xff]  }
  0x3f   :  { %1653 = vmatpush3.bf16.msra.mxu0 %v1934_v1  ;;  %1721 = vmatpush3.bf16.msra.mxu1 %v1955_v7  ;;  %v1956_v9 = vld [vmem:[#allocation7 + $0x30] sm:$0xff]   ;;  %v1941_v10 = vld [vmem:[#allocation5] sm:$0xff]   ;;  %v1957_v11 = vld [vmem:[#allocation7 + $0x28] sm:$0xff]  }
  0x40   :  { %1654 = vmatprep.subr.bf16.mxu0 %v2214_v0  ;;  %1722 = vmatprep.subr.bf16.mxu1 %v2214_v0  ;;  %v1942_v12 = vld [vmem:[#allocation2] sm:$0xff]   ;;  %v1943_v15 = vld [vmem:[#allocation2 + $0x8] sm:$0xff]   ;;  %v1944_v16 = vld [vmem:[#allocation2 + $0x10] sm:$0xff]  }
  0x41   :  { %v1958_v13 = vld [vmem:[#allocation7 + $0x20] sm:$0xff]   ;;  %v1959_v14 = vld [vmem:[#allocation7 + $0x18] sm:$0xff]   ;;  %v1948_v20 = vld [vmem:[#allocation2 + $0x30] sm:$0xff]  }
  0x42   :  { %v1945_v17 = vld [vmem:[#allocation2 + $0x18] sm:$0xff]   ;;  %v1946_v18 = vld [vmem:[#allocation2 + $0x20] sm:$0xff]   ;;  %v1947_v19 = vld [vmem:[#allocation2 + $0x28] sm:$0xff]  }
  0x43   :  { %1655 = vmatpush3.bf16.msra.mxu0 %v1935_v2  ;;  %1723 = vmatpush3.bf16.msra.mxu1 %v1956_v9  ;;  %v1949_v21 = vld [vmem:[#allocation2 + $0x38] sm:$0xff]   ;;  %v1950_v22 = vld [vmem:[#allocation2 + $0x40] sm:$0xff]   ;;  %v1961_v24 = vld [vmem:[#allocation7 + $0x8] sm:$0xff]  }
  0x44   :  { %1656 = vmatprep.subr.bf16.mxu0 %v2214_v0  ;;  %1724 = vmatprep.subr.bf16.mxu1 %v2214_v0  ;;  %v1960_v23 = vld [vmem:[#allocation7 + $0x10] sm:$0xff]   ;;  %v1951_v25 = vld [vmem:[#allocation2 + $0x48] sm:$0xff]   ;;  %v1954_v29 = vld [vmem:[#allocation2 + $0x60] ss:$0 sps:$4 sm:$0xff]  }
  0x45   :  { %v1962_v26 = vld [vmem:[#allocation7] sm:$0xff]   ;;  %v1952_v27 = vld [vmem:[#allocation2 + $0x50] sm:$0xff]   ;;  %v1953_v28 = vld [vmem:[#allocation2 + $0x58] sm:$0xff]  }
  0x46   :  { %v1963_v30 = vld [vmem:[#allocation8 + $0x38] sm:$0xff]   ;;  %v1964_v31 = vld [vmem:[#allocation8 + $0x30] sm:$0xff]   ;;  %v1965_v32 = vld [vmem:[#allocation8 + $0x28] sm:$0xff]  }
  0x47   :  { %1657 = vmatpush3.bf16.msra.mxu0 %v1936_v3  ;;  %1725 = vmatpush3.bf16.msra.mxu1 %v1957_v11  ;;  %v1966_v33 = vld [vmem:[#allocation8 + $0x20] sm:$0xff]   ;;  %v1967_v34 = vld [vmem:[#allocation8 + $0x18] sm:$0xff]   ;;  %v1968_v35 = vld [vmem:[#allocation8 + $0x10] sm:$0xff]  }
  0x48   :  { %1658 = vmatprep.subr.bf16.mxu0 %v2214_v0  ;;  %1726 = vmatprep.subr.bf16.mxu1 %v2214_v0  ;;  %v2338_v36 = vld [vmem:[%s2549_s5] ss:$0 sm:$0xff]  ;;  %v1969_v38 = vld [vmem:[#allocation8 + $0x8] sm:$0xff]   ;;  %v1970_v43 = vld [vmem:[#allocation8] sm:$0xff]  }
  0x4b   :  { %1659 = vmatpush3.bf16.msra.mxu0 %v1937_v4  ;;  %1727 = vmatpush3.bf16.msra.mxu1 %v1958_v13 }
  0x4c   :  { %1660 = vmatprep.subr.bf16.mxu0 %v2214_v0  ;;  %1728 = vmatprep.subr.bf16.mxu1 %v2214_v0 }
  0x4f   :  { %1661 = vmatpush3.bf16.msra.mxu0 %v1938_v5  ;;  %1729 = vmatpush3.bf16.msra.mxu1 %v1959_v14 }
  0x50   :  { %1662 = vmatprep.subr.bf16.mxu0 %v2214_v0  ;;  %1730 = vmatprep.subr.bf16.mxu1 %v2214_v0 }
  0x53   :  { %1663 = vmatpush3.bf16.msra.mxu0 %v1939_v6  ;;  %1731 = vmatpush3.bf16.msra.mxu1 %v1960_v23 }
  0x54   :  { %1664 = vmatprep.subr.bf16.mxu0 %v2214_v0  ;;  %1732 = vmatprep.subr.bf16.mxu1 %v2214_v0 }
  0x57   :  { %1665 = vmatpush3.bf16.msra.mxu0 %v1940_v8  ;;  %1733 = vmatpush3.bf16.msra.mxu1 %v1961_v24 }
  0x58   :  { %1666 = vmatprep.subr.bf16.mxu0 %v2214_v0  ;;  %1734 = vmatprep.subr.bf16.mxu1 %v2214_v0 }
  0x5b   :  { %1667 = vmatpush3.bf16.msra.mxu0 %v1941_v10  ;;  %1735 = vmatpush3.bf16.msra.mxu1 %v1962_v26 }
  0x5c   :  { %1788 = vmatprep.subr.bf16.mxu0 %v2214_v0  ;;  %1856 = vmatprep.subr.bf16.mxu1 %v2214_v0 }
  0x5e   :  { %1669 = vmatmul.mubr.bf16.vlgmr.msra.gmra.mxu0 %v1942_v12 }
  0x5f   :  { %1672 = vmatprep.mubr.msk.bf16.mxu0 %vm2215_vm0, %v2214_v0  ;;  %1789 = vmatpush3.bf16.msra.mxu0 %v1963_v30 }
  0x60   :  { %1790 = vmatprep.subr.bf16.mxu0 %v2214_v0 }
  0x63   :  { %1791 = vmatpush3.bf16.msra.mxu0 %v1964_v31 }
  0x64   :  { %1792 = vmatprep.subr.bf16.mxu0 %v2214_v0 }
  0x66   :  { %1673 = vmatmul.mubr.bf16.gmra.mxu0 %v1943_v15 }
  0x67   :  { %1676 = vmatprep.mubr.msk.bf16.mxu0 %vm2215_vm0, %v2214_v0  ;;  %1793 = vmatpush3.bf16.msra.mxu0 %v1965_v32 }
  0x68   :  { %1794 = vmatprep.subr.bf16.mxu0 %v2214_v0 }
  0x6b   :  { %1795 = vmatpush3.bf16.msra.mxu0 %v1966_v33 }
  0x6c   :  { %1796 = vmatprep.subr.bf16.mxu0 %v2214_v0 }
  0x6e   :  { %1677 = vmatmul.mubr.bf16.gmra.mxu0 %v1944_v16 }
  0x6f   :  { %1680 = vmatprep.mubr.msk.bf16.mxu0 %vm2215_vm0, %v2214_v0  ;;  %1797 = vmatpush3.bf16.msra.mxu0 %v1967_v34 }
  0x70   :  { %1798 = vmatprep.subr.bf16.mxu0 %v2214_v0 }
  0x73   :  { %1799 = vmatpush3.bf16.msra.mxu0 %v1968_v35 }
  0x74   :  { %1800 = vmatprep.subr.bf16.mxu0 %v2214_v0 }
  0x76   :  { %1681 = vmatmul.mubr.bf16.gmra.mxu0 %v1945_v17 }
  0x77   :  { %1684 = vmatprep.mubr.msk.bf16.mxu0 %vm2215_vm0, %v2214_v0  ;;  %1801 = vmatpush3.bf16.msra.mxu0 %v1969_v38 }
  0x78   :  { %1802 = vmatprep.subr.bf16.mxu0 %v2214_v0 }
  0x7b   :  { %1803 = vmatpush3.bf16.msra.mxu0 %v1970_v43 }
  0x7e   :  { %1685 = vmatmul.mubr.bf16.gmra.mxu0 %v1946_v18 }
  0x7f   :  { %1688 = vmatprep.mubr.msk.bf16.mxu0 %vm2215_vm0, %v2214_v0 }
  0x86   :  { %1689 = vmatmul.mubr.bf16.gmra.mxu0 %v1947_v19 }
  0x87   :  { %1692 = vmatprep.mubr.msk.bf16.mxu0 %vm2215_vm0, %v2214_v0 }
  0x8e   :  { %1693 = vmatmul.mubr.bf16.gmra.mxu0 %v1948_v20 }
  0x8f   :  { %1696 = vmatprep.mubr.msk.bf16.mxu0 %vm2215_vm0, %v2214_v0 }
  0x96   :  { %1697 = vmatmul.mubr.bf16.gmra.mxu0 %v1949_v21 }
  0x97   :  { %1700 = vmatprep.mubr.msk.bf16.mxu0 %vm2215_vm0, %v2214_v0 }
  0x9e   :  { %1701 = vmatmul.mubr.bf16.gmra.mxu0 %v1950_v22 }
  0x9f   :  { %1704 = vmatprep.mubr.msk.bf16.mxu0 %vm2215_vm0, %v2214_v0 }
  0xa6   :  { %1705 = vmatmul.mubr.bf16.gmra.mxu0 %v1951_v25 }
  0xa7   :  { %1708 = vmatprep.mubr.msk.bf16.mxu0 %vm2215_vm0, %v2214_v0 }
  0xae   :  { %1709 = vmatmul.mubr.bf16.gmra.mxu0 %v1952_v27 }
  0xaf   :  { %1712 = vmatprep.mubr.msk.bf16.mxu0 %vm2215_vm0, %v2214_v0 }
  0xb6   :  { %1713 = vmatmul.mubr.bf16.gmra.mxu0 %v1953_v28 }
  0xb7   :  { %1716 = vmatprep.mubr.msk.bf16.mxu0 %vm2215_vm0, %v2214_v0 }
  0xbe   :  { %1717 = vmatmul.mubr.bf16.gmra.mxu0 %v1954_v29 }
  0xbf   :  { %1804 = vmatprep.mubr.msk.bf16.mxu0 %vm2215_vm0, %v2214_v0 }
 0x11e   :  { %v297_v37 = vpop.f32.mrf.mxu0 }
 0x11f   :  { %v298_v40 = vadd.f32 %v2338_v36, %v297_v37 }
 0x120   :  { %v1670_v39 = vpop.f32.mrf.mxu0 }
 0x121   :  { %v399_v45 = vmax.f32 %v298_v40, 0.0 }
 0x122   :  { %v300_v41 = vpop.f32.mrf.mxu0 }
 0x123   :  { %v301_v42 = vadd.f32 %v2338_v36, %v300_v41 }
 0x124   :  { %v1671_v44 = vpop.f32.mrf.mxu0 }
 0x125   :  { %v400_v46 = vmax.f32 %v301_v42, 0.0 }
 0x126   :  { %v305_v47 = vpop.f32.mrf.mxu0 }
 0x127   :  { %v424_v48 = vpack.c.bf16 %v400_v46, %v399_v45  ;;  %v306_v50 = vadd.f32 %v2338_v36, %v305_v47 }
 0x128   :  { %v1674_v49 = vpop.f32.mrf.mxu0 }
 0x129   :  { %1737 = vmatmul.mubr.bf16.vlgmr.msra.gmra.mxu1 %v424_v48  ;;  %v401_v54 = vmax.f32 %v306_v50, 0.0 }
 0x12a   :  { %v308_v51 = vpop.f32.mrf.mxu0  ;;  %1740 = vmatprep.mubr.msk.bf16.mxu1 %vm2215_vm0, %v2214_v0 }
 0x12b   :  { %v309_v52 = vadd.f32 %v2338_v36, %v308_v51 }
 0x12c   :  { %v1675_v53 = vpop.f32.mrf.mxu0 }
 0x12d   :  { %v402_v55 = vmax.f32 %v309_v52, 0.0 }
 0x12e   :  { %v313_v56 = vpop.f32.mrf.mxu0 }
 0x12f   :  { %v425_v57 = vpack.c.bf16 %v402_v55, %v401_v54  ;;  %v314_v59 = vadd.f32 %v2338_v36, %v313_v56 }
 0x130   :  { %v1678_v58 = vpop.f32.mrf.mxu0 }
 0x131   :  { %1741 = vmatmul.mubr.bf16.gmra.mxu1 %v425_v57  ;;  %v403_v63 = vmax.f32 %v314_v59, 0.0 }
 0x132   :  { %v316_v60 = vpop.f32.mrf.mxu0  ;;  %1744 = vmatprep.mubr.msk.bf16.mxu1 %vm2215_vm0, %v2214_v0 }
 0x133   :  { %v317_v61 = vadd.f32 %v2338_v36, %v316_v60 }
 0x134   :  { %v1679_v62 = vpop.f32.mrf.mxu0 }
 0x135   :  { %v404_v1 = vmax.f32 %v317_v61, 0.0 }
 0x136   :  { %v321_v2 = vpop.f32.mrf.mxu0 }
 0x137   :  { %v426_v3 = vpack.c.bf16 %v404_v1, %v403_v63  ;;  %v322_v5 = vadd.f32 %v2338_v36, %v321_v2 }
 0x138   :  { %v1682_v4 = vpop.f32.mrf.mxu0 }
 0x139   :  { %1745 = vmatmul.mubr.bf16.gmra.mxu1 %v426_v3  ;;  %v405_v9 = vmax.f32 %v322_v5, 0.0 }
 0x13a   :  { %v324_v6 = vpop.f32.mrf.mxu0  ;;  %1748 = vmatprep.mubr.msk.bf16.mxu1 %vm2215_vm0, %v2214_v0 }
 0x13b   :  { %v325_v7 = vadd.f32 %v2338_v36, %v324_v6 }
 0x13c   :  { %v1683_v8 = vpop.f32.mrf.mxu0 }
 0x13d   :  { %v406_v10 = vmax.f32 %v325_v7, 0.0 }
 0x13e   :  { %v329_v11 = vpop.f32.mrf.mxu0 }
 0x13f   :  { %v427_v12 = vpack.c.bf16 %v406_v10, %v405_v9  ;;  %v330_v14 = vadd.f32 %v2338_v36, %v329_v11 }
 0x140   :  { %v1686_v13 = vpop.f32.mrf.mxu0 }
 0x141   :  { %1749 = vmatmul.mubr.bf16.gmra.mxu1 %v427_v12  ;;  %v407_v18 = vmax.f32 %v330_v14, 0.0 }
 0x142   :  { %v332_v15 = vpop.f32.mrf.mxu0  ;;  %1752 = vmatprep.mubr.msk.bf16.mxu1 %vm2215_vm0, %v2214_v0 }
 0x143   :  { %v333_v16 = vadd.f32 %v2338_v36, %v332_v15 }
 0x144   :  { %v1687_v17 = vpop.f32.mrf.mxu0 }
 0x145   :  { %v408_v19 = vmax.f32 %v333_v16, 0.0 }
 0x146   :  { %v337_v20 = vpop.f32.mrf.mxu0 }
 0x147   :  { %v428_v21 = vpack.c.bf16 %v408_v19, %v407_v18  ;;  %v338_v23 = vadd.f32 %v2338_v36, %v337_v20 }
 0x148   :  { %v1690_v22 = vpop.f32.mrf.mxu0 }
 0x149   :  { %1753 = vmatmul.mubr.bf16.gmra.mxu1 %v428_v21  ;;  %v409_v27 = vmax.f32 %v338_v23, 0.0 }
 0x14a   :  { %v340_v24 = vpop.f32.mrf.mxu0  ;;  %1756 = vmatprep.mubr.msk.bf16.mxu1 %vm2215_vm0, %v2214_v0 }
 0x14b   :  { %v341_v25 = vadd.f32 %v2338_v36, %v340_v24 }
 0x14c   :  { %v1691_v26 = vpop.f32.mrf.mxu0 }
 0x14d   :  { %v410_v28 = vmax.f32 %v341_v25, 0.0 }
 0x14e   :  { %v345_v29 = vpop.f32.mrf.mxu0 }
 0x14f   :  { %v429_v30 = vpack.c.bf16 %v410_v28, %v409_v27  ;;  %v346_v32 = vadd.f32 %v2338_v36, %v345_v29  ;;  %v1971_v29 = vld [vmem:[#allocation10 + $0x38] sm:$0xff]  }
 0x150   :  { %v1694_v31 = vpop.f32.mrf.mxu0  ;;  %1857 = vmatpush3.bf16.msra.mxu1 %v1971_v29 }
 0x151   :  { %1757 = vmatmul.mubr.bf16.gmra.mxu1 %v429_v30  ;;  %v411_v37 = vmax.f32 %v346_v32, 0.0  ;;  %v1972_v30 = vld [vmem:[#allocation10 + $0x30] sm:$0xff]   ;;  %1858 = vmatprep.subr.bf16.mxu1 %v2214_v0  ;;  %v1974_v31 = vld [vmem:[#allocation10 + $0x20] sm:$0xff]   ;;  %v1975_v32 = vld [vmem:[#allocation10 + $0x18] sm:$0xff]  }
 0x152   :  { %v348_v33 = vpop.f32.mrf.mxu0  ;;  %1760 = vmatprep.mubr.msk.bf16.mxu1 %vm2215_vm0, %v2214_v0 }
 0x153   :  { %v349_v34 = vadd.f32 %v2338_v36, %v348_v33  ;;  %v1976_v33 = vld [vmem:[#allocation10 + $0x10] sm:$0xff]  }
 0x154   :  { %v1695_v35 = vpop.f32.mrf.mxu0  ;;  %1859 = vmatpush3.bf16.msra.mxu1 %v1972_v30 }
 0x155   :  { %v412_v38 = vmax.f32 %v349_v34, 0.0  ;;  %1860 = vmatprep.subr.bf16.mxu1 %v2214_v0  ;;  %v2401_v34 = vld [vmem:[%s2549_s5 + $0x1] ss:$0 sm:$0xff] }
 0x156   :  { %v353_v39 = vpop.f32.mrf.mxu0 }
 0x157   :  { %v430_v40 = vpack.c.bf16 %v412_v38, %v411_v37  ;;  %v354_v42 = vadd.f32 %v2338_v36, %v353_v39  ;;  %v1977_v37 = vld [vmem:[#allocation10 + $0x8] sm:$0xff]  }
 0x158   :  { %v1698_v41 = vpop.f32.mrf.mxu0 }
 0x159   :  { %1761 = vmatmul.mubr.bf16.gmra.mxu1 %v430_v40  ;;  %v413_v46 = vmax.f32 %v354_v42, 0.0  ;;  %v1978_v42 = vld [vmem:[#allocation10] sm:$0xff]  }
 0x15a   :  { %v356_v43 = vpop.f32.mrf.mxu0  ;;  %1764 = vmatprep.mubr.msk.bf16.mxu1 %vm2215_vm0, %v2214_v0 }
 0x15b   :  { %v357_v44 = vadd.f32 %v2338_v36, %v356_v43 }
 0x15c   :  { %v1699_v45 = vpop.f32.mrf.mxu0 }
 0x15d   :  { %v414_v47 = vmax.f32 %v357_v44, 0.0 }
 0x15e   :  { %v361_v48 = vpop.f32.mrf.mxu0 }
 0x15f   :  { %v431_v49 = vpack.c.bf16 %v414_v47, %v413_v46  ;;  %v362_v51 = vadd.f32 %v2338_v36, %v361_v48 }
 0x160   :  { %v1702_v50 = vpop.f32.mrf.mxu0 }
 0x161   :  { %1765 = vmatmul.mubr.bf16.gmra.mxu1 %v431_v49  ;;  %v415_v55 = vmax.f32 %v362_v51, 0.0 }
 0x162   :  { %v364_v52 = vpop.f32.mrf.mxu0  ;;  %1768 = vmatprep.mubr.msk.bf16.mxu1 %vm2215_vm0, %v2214_v0 }
 0x163   :  { %v365_v53 = vadd.f32 %v2338_v36, %v364_v52 }
 0x164   :  { %v1703_v54 = vpop.f32.mrf.mxu0 }
 0x165   :  { %v416_v56 = vmax.f32 %v365_v53, 0.0 }
 0x166   :  { %v369_v57 = vpop.f32.mrf.mxu0 }
 0x167   :  { %v432_v58 = vpack.c.bf16 %v416_v56, %v415_v55  ;;  %v370_v60 = vadd.f32 %v2338_v36, %v369_v57 }
 0x168   :  { %v1706_v59 = vpop.f32.mrf.mxu0 }
 0x169   :  { %1769 = vmatmul.mubr.bf16.gmra.mxu1 %v432_v58  ;;  %v417_v1 = vmax.f32 %v370_v60, 0.0 }
 0x16a   :  { %v372_v61 = vpop.f32.mrf.mxu0  ;;  %1772 = vmatprep.mubr.msk.bf16.mxu1 %vm2215_vm0, %v2214_v0 }
 0x16b   :  { %v373_v62 = vadd.f32 %v2338_v36, %v372_v61 }
 0x16c   :  { %v1707_v63 = vpop.f32.mrf.mxu0 }
 0x16d   :  { %v418_v2 = vmax.f32 %v373_v62, 0.0 }
 0x16e   :  { %v377_v3 = vpop.f32.mrf.mxu0 }
 0x16f   :  { %v433_v4 = vpack.c.bf16 %v418_v2, %v417_v1  ;;  %v378_v6 = vadd.f32 %v2338_v36, %v377_v3 }
 0x170   :  { %v1710_v5 = vpop.f32.mrf.mxu0 }
 0x171   :  { %1773 = vmatmul.mubr.bf16.gmra.mxu1 %v433_v4  ;;  %v419_v10 = vmax.f32 %v378_v6, 0.0 }
 0x172   :  { %v380_v7 = vpop.f32.mrf.mxu0  ;;  %1776 = vmatprep.mubr.msk.bf16.mxu1 %vm2215_vm0, %v2214_v0 }
 0x173   :  { %v381_v8 = vadd.f32 %v2338_v36, %v380_v7 }
 0x174   :  { %v1711_v9 = vpop.f32.mrf.mxu0 }
 0x175   :  { %v420_v11 = vmax.f32 %v381_v8, 0.0 }
 0x176   :  { %v385_v12 = vpop.f32.mrf.mxu0 }
 0x177   :  { %v434_v13 = vpack.c.bf16 %v420_v11, %v419_v10  ;;  %v386_v15 = vadd.f32 %v2338_v36, %v385_v12 }
 0x178   :  { %v1714_v14 = vpop.f32.mrf.mxu0 }
 0x179   :  { %1777 = vmatmul.mubr.bf16.gmra.mxu1 %v434_v13  ;;  %v421_v19 = vmax.f32 %v386_v15, 0.0 }
 0x17a   :  { %v388_v16 = vpop.f32.mrf.mxu0  ;;  %1780 = vmatprep.mubr.msk.bf16.mxu1 %vm2215_vm0, %v2214_v0 }
 0x17b   :  { %v389_v17 = vadd.f32 %v2338_v36, %v388_v16 }
 0x17c   :  { %v1715_v18 = vpop.f32.mrf.mxu0 }
 0x17d   :  { %v422_v20 = vmax.f32 %v389_v17, 0.0 }
 0x17e   :  { %v393_v21 = vpop.f32.mrf.mxu0 }
 0x17f   :  { %v435_v22 = vpack.c.bf16 %v422_v20, %v421_v19  ;;  %v394_v23 = vadd.f32 %v2338_v36, %v393_v21  ;;  %v1973_v36 = vld [vmem:[#allocation10 + $0x28] sm:$0xff]  }
 0x180   :  { %v1718_v24 = vpop.f32.mrf.mxu0  ;;  %1861 = vmatpush3.bf16.msra.mxu1 %v1973_v36 }
 0x181   :  { %1781 = vmatmul.mubr.bf16.gmra.mxu1 %v435_v22  ;;  %v423_v25 = vmax.f32 %v394_v23, 0.0  ;;  %1862 = vmatprep.subr.bf16.mxu1 %v2214_v0 }
 0x182   :  { %v396_v26 = vpop.f32.mrf.mxu0  ;;  %1784 = vmatprep.mubr.msk.bf16.mxu1 %vm2215_vm0, %v2214_v0 }
 0x183   :  { %v436_v28 = vpack.c.bf16 %v423_v25, %v423_v25 }
 0x184   :  { %v1719_v27 = vpop.f32.mrf.mxu0  ;;  %1863 = vmatpush3.bf16.msra.mxu1 %v1974_v31 }
 0x185   :  { %1864 = vmatprep.subr.bf16.mxu1 %v2214_v0 }
 0x188   :  { %1865 = vmatpush3.bf16.msra.mxu1 %v1975_v32 }
 0x189   :  { %1785 = vmatmul.mubr.bf16.gmra.mxu1 %v436_v28  ;;  %1866 = vmatprep.subr.bf16.mxu1 %v2214_v0 }
 0x18a   :  { %1872 = vmatprep.mubr.msk.bf16.mxu1 %vm2215_vm0, %v2214_v0 }
 0x18c   :  { %1867 = vmatpush3.bf16.msra.mxu1 %v1976_v33 }
 0x18d   :  { %1868 = vmatprep.subr.bf16.mxu1 %v2214_v0 }
 0x190   :  { %1869 = vmatpush3.bf16.msra.mxu1 %v1977_v37 }
 0x191   :  { %1870 = vmatprep.subr.bf16.mxu1 %v2214_v0 }
 0x194   :  { %1871 = vmatpush3.bf16.msra.mxu1 %v1978_v42 }
 0x1e9   :  { %v540_v35 = vpop.f32.mrf.mxu1 }
 0x1ea   :  { %v541_v39 = vadd.f32 %v2401_v34, %v540_v35 }
 0x1eb   :  { %v1738_v38 = vpop.f32.mrf.mxu1 }
 0x1ec   :  { %v642_v44 = vmax.f32 %v541_v39, 0.0 }
 0x1ed   :  { %v543_v40 = vpop.f32.mrf.mxu1 }
 0x1ee   :  { %v544_v41 = vadd.f32 %v2401_v34, %v543_v40 }
 0x1ef   :  { %v1739_v43 = vpop.f32.mrf.mxu1 }
 0x1f0   :  { %v643_v45 = vmax.f32 %v544_v41, 0.0 }
 0x1f1   :  { %v548_v46 = vpop.f32.mrf.mxu1 }
 0x1f2   :  { %v667_v47 = vpack.c.bf16 %v643_v45, %v642_v44  ;;  %v549_v49 = vadd.f32 %v2401_v34, %v548_v46 }
 0x1f3   :  { %v1742_v48 = vpop.f32.mrf.mxu1 }
 0x1f4   :  { %1805 = vmatmul.mubr.bf16.vlgmr.msra.gmra.mxu0 %v667_v47  ;;  %v644_v53 = vmax.f32 %v549_v49, 0.0 }
 0x1f5   :  { %v551_v50 = vpop.f32.mrf.mxu1  ;;  %1808 = vmatprep.mubr.msk.bf16.mxu0 %vm2215_vm0, %v2214_v0 }
 0x1f6   :  { %v552_v51 = vadd.f32 %v2401_v34, %v551_v50 }
 0x1f7   :  { %v1743_v52 = vpop.f32.mrf.mxu1 }
 0x1f8   :  { %v645_v54 = vmax.f32 %v552_v51, 0.0 }
 0x1f9   :  { %v556_v55 = vpop.f32.mrf.mxu1 }
 0x1fa   :  { %v668_v56 = vpack.c.bf16 %v645_v54, %v644_v53  ;;  %v557_v58 = vadd.f32 %v2401_v34, %v556_v55 }
 0x1fb   :  { %v1746_v57 = vpop.f32.mrf.mxu1 }
 0x1fc   :  { %1809 = vmatmul.mubr.bf16.gmra.mxu0 %v668_v56  ;;  %v646_v62 = vmax.f32 %v557_v58, 0.0 }
 0x1fd   :  { %v559_v59 = vpop.f32.mrf.mxu1  ;;  %1812 = vmatprep.mubr.msk.bf16.mxu0 %vm2215_vm0, %v2214_v0 }
 0x1fe   :  { %v560_v60 = vadd.f32 %v2401_v34, %v559_v59 }
 0x1ff   :  { %v1747_v61 = vpop.f32.mrf.mxu1 }
 0x200   :  { %v647_v63 = vmax.f32 %v560_v60, 0.0 }
 0x201   :  { %v564_v1 = vpop.f32.mrf.mxu1 }
 0x202   :  { %v669_v2 = vpack.c.bf16 %v647_v63, %v646_v62  ;;  %v565_v4 = vadd.f32 %v2401_v34, %v564_v1 }
 0x203   :  { %v1750_v3 = vpop.f32.mrf.mxu1 }
 0x204   :  { %1813 = vmatmul.mubr.bf16.gmra.mxu0 %v669_v2  ;;  %v648_v8 = vmax.f32 %v565_v4, 0.0 }
 0x205   :  { %v567_v5 = vpop.f32.mrf.mxu1  ;;  %1816 = vmatprep.mubr.msk.bf16.mxu0 %vm2215_vm0, %v2214_v0 }
 0x206   :  { %v568_v6 = vadd.f32 %v2401_v34, %v567_v5 }
 0x207   :  { %v1751_v7 = vpop.f32.mrf.mxu1 }
 0x208   :  { %v649_v9 = vmax.f32 %v568_v6, 0.0 }
 0x209   :  { %v572_v10 = vpop.f32.mrf.mxu1 }
 0x20a   :  { %v670_v11 = vpack.c.bf16 %v649_v9, %v648_v8  ;;  %v573_v13 = vadd.f32 %v2401_v34, %v572_v10 }
 0x20b   :  { %v1754_v12 = vpop.f32.mrf.mxu1 }
 0x20c   :  { %1817 = vmatmul.mubr.bf16.gmra.mxu0 %v670_v11  ;;  %v650_v17 = vmax.f32 %v573_v13, 0.0 }
 0x20d   :  { %v575_v14 = vpop.f32.mrf.mxu1  ;;  %1820 = vmatprep.mubr.msk.bf16.mxu0 %vm2215_vm0, %v2214_v0 }
 0x20e   :  { %v576_v15 = vadd.f32 %v2401_v34, %v575_v14 }
 0x20f   :  { %v1755_v16 = vpop.f32.mrf.mxu1 }
 0x210   :  { %v651_v18 = vmax.f32 %v576_v15, 0.0 }
 0x211   :  { %v580_v19 = vpop.f32.mrf.mxu1 }
 0x212   :  { %v671_v20 = vpack.c.bf16 %v651_v18, %v650_v17  ;;  %v581_v22 = vadd.f32 %v2401_v34, %v580_v19 }
 0x213   :  { %v1758_v21 = vpop.f32.mrf.mxu1 }
 0x214   :  { %1821 = vmatmul.mubr.bf16.gmra.mxu0 %v671_v20  ;;  %v652_v26 = vmax.f32 %v581_v22, 0.0 }
 0x215   :  { %v583_v23 = vpop.f32.mrf.mxu1  ;;  %1824 = vmatprep.mubr.msk.bf16.mxu0 %vm2215_vm0, %v2214_v0 }
 0x216   :  { %v584_v24 = vadd.f32 %v2401_v34, %v583_v23 }
 0x217   :  { %v1759_v25 = vpop.f32.mrf.mxu1 }
 0x218   :  { %v653_v27 = vmax.f32 %v584_v24, 0.0 }
 0x219   :  { %v588_v28 = vpop.f32.mrf.mxu1 }
 0x21a   :  { %v672_v29 = vpack.c.bf16 %v653_v27, %v652_v26  ;;  %v589_v36 = vadd.f32 %v2401_v34, %v588_v28  ;;  %v2457_v28 = vld [vmem:[%s2549_s5 + $0x2] ss:$0 sm:$0xff] }
 0x21b   :  { %v1762_v30 = vpop.f32.mrf.mxu1 }
 0x21c   :  { %1825 = vmatmul.mubr.bf16.gmra.mxu0 %v672_v29  ;;  %v654_v35 = vmax.f32 %v589_v36, 0.0 }
 0x21d   :  { %v591_v31 = vpop.f32.mrf.mxu1  ;;  %1828 = vmatprep.mubr.msk.bf16.mxu0 %vm2215_vm0, %v2214_v0 }
 0x21e   :  { %v592_v32 = vadd.f32 %v2401_v34, %v591_v31 }
 0x21f   :  { %v1763_v33 = vpop.f32.mrf.mxu1 }
 0x220   :  { %v655_v37 = vmax.f32 %v592_v32, 0.0 }
 0x221   :  { %v596_v38 = vpop.f32.mrf.mxu1 }
 0x222   :  { %v673_v39 = vpack.c.bf16 %v655_v37, %v654_v35  ;;  %v597_v41 = vadd.f32 %v2401_v34, %v596_v38 }
 0x223   :  { %v1766_v40 = vpop.f32.mrf.mxu1 }
 0x224   :  { %1829 = vmatmul.mubr.bf16.gmra.mxu0 %v673_v39  ;;  %v656_v45 = vmax.f32 %v597_v41, 0.0 }
 0x225   :  { %v599_v42 = vpop.f32.mrf.mxu1  ;;  %1832 = vmatprep.mubr.msk.bf16.mxu0 %vm2215_vm0, %v2214_v0 }
 0x226   :  { %v600_v43 = vadd.f32 %v2401_v34, %v599_v42 }
 0x227   :  { %v1767_v44 = vpop.f32.mrf.mxu1 }
 0x228   :  { %v657_v46 = vmax.f32 %v600_v43, 0.0 }
 0x229   :  { %v604_v47 = vpop.f32.mrf.mxu1 }
 0x22a   :  { %v674_v48 = vpack.c.bf16 %v657_v46, %v656_v45  ;;  %v605_v50 = vadd.f32 %v2401_v34, %v604_v47 }
 0x22b   :  { %v1770_v49 = vpop.f32.mrf.mxu1 }
 0x22c   :  { %1833 = vmatmul.mubr.bf16.gmra.mxu0 %v674_v48  ;;  %v658_v54 = vmax.f32 %v605_v50, 0.0 }
 0x22d   :  { %v607_v51 = vpop.f32.mrf.mxu1  ;;  %1836 = vmatprep.mubr.msk.bf16.mxu0 %vm2215_vm0, %v2214_v0 }
 0x22e   :  { %v608_v52 = vadd.f32 %v2401_v34, %v607_v51 }
 0x22f   :  { %v1771_v53 = vpop.f32.mrf.mxu1 }
 0x230   :  { %v659_v55 = vmax.f32 %v608_v52, 0.0 }
 0x231   :  { %v612_v56 = vpop.f32.mrf.mxu1 }
 0x232   :  { %v675_v57 = vpack.c.bf16 %v659_v55, %v658_v54  ;;  %v613_v59 = vadd.f32 %v2401_v34, %v612_v56 }
 0x233   :  { %v1774_v58 = vpop.f32.mrf.mxu1 }
 0x234   :  { %1837 = vmatmul.mubr.bf16.gmra.mxu0 %v675_v57  ;;  %v660_v63 = vmax.f32 %v613_v59, 0.0 }
 0x235   :  { %v615_v60 = vpop.f32.mrf.mxu1  ;;  %1840 = vmatprep.mubr.msk.bf16.mxu0 %vm2215_vm0, %v2214_v0 }
 0x236   :  { %v616_v61 = vadd.f32 %v2401_v34, %v615_v60 }
 0x237   :  { %v1775_v62 = vpop.f32.mrf.mxu1 }
 0x238   :  { %v661_v1 = vmax.f32 %v616_v61, 0.0 }
 0x239   :  { %v620_v2 = vpop.f32.mrf.mxu1 }
 0x23a   :  { %v676_v3 = vpack.c.bf16 %v661_v1, %v660_v63  ;;  %v621_v5 = vadd.f32 %v2401_v34, %v620_v2 }
 0x23b   :  { %v1778_v4 = vpop.f32.mrf.mxu1 }
 0x23c   :  { %1841 = vmatmul.mubr.bf16.gmra.mxu0 %v676_v3  ;;  %v662_v9 = vmax.f32 %v621_v5, 0.0 }
 0x23d   :  { %v623_v6 = vpop.f32.mrf.mxu1  ;;  %1844 = vmatprep.mubr.msk.bf16.mxu0 %vm2215_vm0, %v2214_v0 }
 0x23e   :  { %v624_v7 = vadd.f32 %v2401_v34, %v623_v6 }
 0x23f   :  { %v1779_v8 = vpop.f32.mrf.mxu1 }
 0x240   :  { %v663_v10 = vmax.f32 %v624_v7, 0.0 }
 0x241   :  { %v628_v11 = vpop.f32.mrf.mxu1 }
 0x242   :  { %v677_v12 = vpack.c.bf16 %v663_v10, %v662_v9  ;;  %v629_v14 = vadd.f32 %v2401_v34, %v628_v11 }
 0x243   :  { %v1782_v13 = vpop.f32.mrf.mxu1 }
 0x244   :  { %1845 = vmatmul.mubr.bf16.gmra.mxu0 %v677_v12  ;;  %v664_v18 = vmax.f32 %v629_v14, 0.0 }
 0x245   :  { %v631_v15 = vpop.f32.mrf.mxu1  ;;  %1848 = vmatprep.mubr.msk.bf16.mxu0 %vm2215_vm0, %v2214_v0 }
 0x246   :  { %v632_v16 = vadd.f32 %v2401_v34, %v631_v15 }
 0x247   :  { %v1783_v17 = vpop.f32.mrf.mxu1 }
 0x248   :  { %v665_v19 = vmax.f32 %v632_v16, 0.0 }
 0x249   :  { %v636_v20 = vpop.f32.mrf.mxu1 }
 0x24a   :  { %v678_v21 = vpack.c.bf16 %v665_v19, %v664_v18  ;;  %v637_v22 = vadd.f32 %v2401_v34, %v636_v20 }
 0x24b   :  { %v1786_v23 = vpop.f32.mrf.mxu1 }
 0x24c   :  { %v666_v24 = vmax.f32 %v637_v22, 0.0  ;;  %1849 = vmatmul.mubr.bf16.gmra.mxu0 %v678_v21 }
 0x24d   :  { %v639_v25 = vpop.f32.mrf.mxu1  ;;  %1852 = vmatprep.mubr.msk.bf16.mxu0 %vm2215_vm0, %v2214_v0 }
 0x24e   :  { %v679_v27 = vpack.c.bf16 %v666_v24, %v666_v24 }
 0x24f   :  { %v1787_v26 = vpop.f32.mrf.mxu1 }
 0x254   :  { %1853 = vmatmul.mubr.bf16.gmra.mxu0 %v679_v27 }
 0x2b4   :  { %v783_v29 = vpop.f32.mrf.mxu0 }
 0x2b5   :  { %v784_v36 = vadd.f32 %v2457_v28, %v783_v29 }
 0x2b6   :  { %v1806_v30 = vpop.f32.mrf.mxu0 }
 0x2b7   :  { %v885_v33 = vmax.f32 %v784_v36, 0.0 }
 0x2b8   :  { %v786_v34 = vpop.f32.mrf.mxu0 }
 0x2b9   :  { %v787_v31 = vadd.f32 %v2457_v28, %v786_v34 }
 0x2ba   :  { %v1807_v32 = vpop.f32.mrf.mxu0 }
 0x2bb   :  { %v886_v35 = vmax.f32 %v787_v31, 0.0 }
 0x2bc   :  { %v791_v37 = vpop.f32.mrf.mxu0 }
 0x2bd   :  { %v910_v38 = vpack.c.bf16 %v886_v35, %v885_v33  ;;  %v792_v40 = vadd.f32 %v2457_v28, %v791_v37 }
 0x2be   :  { %v1810_v39 = vpop.f32.mrf.mxu0 }
 0x2bf   :  { %1873 = vmatmul.mubr.bf16.vlgmr.msra.gmra.mxu1 %v910_v38  ;;  %v887_v44 = vmax.f32 %v792_v40, 0.0 }
 0x2c0   :  { %v794_v41 = vpop.f32.mrf.mxu0  ;;  %1876 = vmatprep.mubr.msk.bf16.mxu1 %vm2215_vm0, %v2214_v0 }
 0x2c1   :  { %v795_v42 = vadd.f32 %v2457_v28, %v794_v41 }
 0x2c2   :  { %v1811_v43 = vpop.f32.mrf.mxu0 }
 0x2c3   :  { %v888_v45 = vmax.f32 %v795_v42, 0.0 }
 0x2c4   :  { %v799_v46 = vpop.f32.mrf.mxu0 }
 0x2c5   :  { %v911_v47 = vpack.c.bf16 %v888_v45, %v887_v44  ;;  %v800_v49 = vadd.f32 %v2457_v28, %v799_v46 }
 0x2c6   :  { %v1814_v48 = vpop.f32.mrf.mxu0 }
 0x2c7   :  { %1877 = vmatmul.mubr.bf16.gmra.mxu1 %v911_v47  ;;  %v889_v53 = vmax.f32 %v800_v49, 0.0 }
 0x2c8   :  { %v802_v50 = vpop.f32.mrf.mxu0  ;;  %1880 = vmatprep.mubr.msk.bf16.mxu1 %vm2215_vm0, %v2214_v0 }
 0x2c9   :  { %v803_v51 = vadd.f32 %v2457_v28, %v802_v50 }
 0x2ca   :  { %v1815_v52 = vpop.f32.mrf.mxu0 }
 0x2cb   :  { %v890_v54 = vmax.f32 %v803_v51, 0.0 }
 0x2cc   :  { %v807_v55 = vpop.f32.mrf.mxu0 }
 0x2cd   :  { %v912_v56 = vpack.c.bf16 %v890_v54, %v889_v53  ;;  %v808_v58 = vadd.f32 %v2457_v28, %v807_v55 }
 0x2ce   :  { %v1818_v57 = vpop.f32.mrf.mxu0 }
 0x2cf   :  { %1881 = vmatmul.mubr.bf16.gmra.mxu1 %v912_v56  ;;  %v891_v62 = vmax.f32 %v808_v58, 0.0 }
 0x2d0   :  { %v810_v59 = vpop.f32.mrf.mxu0  ;;  %1884 = vmatprep.mubr.msk.bf16.mxu1 %vm2215_vm0, %v2214_v0 }
 0x2d1   :  { %v811_v60 = vadd.f32 %v2457_v28, %v810_v59 }
 0x2d2   :  { %v1819_v61 = vpop.f32.mrf.mxu0 }
 0x2d3   :  { %v892_v63 = vmax.f32 %v811_v60, 0.0 }
 0x2d4   :  { %v815_v1 = vpop.f32.mrf.mxu0 }
 0x2d5   :  { %v913_v2 = vpack.c.bf16 %v892_v63, %v891_v62  ;;  %v816_v4 = vadd.f32 %v2457_v28, %v815_v1 }
 0x2d6   :  { %v1822_v3 = vpop.f32.mrf.mxu0 }
 0x2d7   :  { %1885 = vmatmul.mubr.bf16.gmra.mxu1 %v913_v2  ;;  %v893_v8 = vmax.f32 %v816_v4, 0.0 }
 0x2d8   :  { %v818_v5 = vpop.f32.mrf.mxu0  ;;  %1888 = vmatprep.mubr.msk.bf16.mxu1 %vm2215_vm0, %v2214_v0 }
 0x2d9   :  { %v819_v6 = vadd.f32 %v2457_v28, %v818_v5 }
 0x2da   :  { %v1823_v7 = vpop.f32.mrf.mxu0 }
 0x2db   :  { %v894_v9 = vmax.f32 %v819_v6, 0.0 }
 0x2dc   :  { %v823_v10 = vpop.f32.mrf.mxu0 }
 0x2dd   :  { %v914_v11 = vpack.c.bf16 %v894_v9, %v893_v8  ;;  %v824_v13 = vadd.f32 %v2457_v28, %v823_v10 }
 0x2de   :  { %v1826_v12 = vpop.f32.mrf.mxu0 }
 0x2df   :  { %1889 = vmatmul.mubr.bf16.gmra.mxu1 %v914_v11  ;;  %v895_v17 = vmax.f32 %v824_v13, 0.0 }
 0x2e0   :  { %v826_v14 = vpop.f32.mrf.mxu0  ;;  %1892 = vmatprep.mubr.msk.bf16.mxu1 %vm2215_vm0, %v2214_v0 }
 0x2e1   :  { %v827_v15 = vadd.f32 %v2457_v28, %v826_v14 }
 0x2e2   :  { %v1827_v16 = vpop.f32.mrf.mxu0 }
 0x2e3   :  { %v896_v18 = vmax.f32 %v827_v15, 0.0 }
 0x2e4   :  { %v831_v19 = vpop.f32.mrf.mxu0 }
 0x2e5   :  { %v915_v20 = vpack.c.bf16 %v896_v18, %v895_v17  ;;  %v832_v22 = vadd.f32 %v2457_v28, %v831_v19  ;;  %v2511_v19 = vld [vmem:[%s2549_s5 + $0x3] ss:$0 sm:$0xff]  ;;  %s2216_s5 = smov [#allocation11]  }
 0x2e6   :  { %v1830_v21 = vpop.f32.mrf.mxu0  ;;  %s1384_s29 = sshll.u32 %s2216_s5, 4  ;;  %s1385_s29 = int_to_ptr.vmem [resolvable:$true] %s1384_s29 }
 0x2e7   :  { %1893 = vmatmul.mubr.bf16.gmra.mxu1 %v915_v20  ;;  %v897_v26 = vmax.f32 %v832_v22, 0.0  ;;  %s2179_s30 = scalar_lea.vmem %s1385_s29, 1600  ;;  %p2184_p12 = scmp.lt.s32.totalorder %s1385_s29, %s1385_s29 }
 0x2e8   :  { %v834_v23 = vpop.f32.mrf.mxu0  ;;  %1896 = vmatprep.mubr.msk.bf16.mxu1 %vm2215_vm0, %v2214_v0  ;;  %p2180_p11 = scmp.ne.s32.totalorder %s1385_s29, %s2179_s30  ;;  %p2185_p13 = scmp.lt.s32.totalorder %s2179_s30, %s2179_s30 }
 0x2e9   :  { %v835_v24 = vadd.f32 %v2457_v28, %v834_v23 }
 0x2ea   :  { %v1831_v25 = vpop.f32.mrf.mxu0  ;;  %p2186_p0 = por %p2185_p13, %p2184_p12 }
 0x2eb   :  { %v898_v27 = vmax.f32 %v835_v24, 0.0 }
 0x2ec   :  { %v839_v29 = vpop.f32.mrf.mxu0  ;;  %p2187_p1 = pnand %p2186_p0, %p2180_p11 }
 0x2ed   :  { %v916_v30 = vpack.c.bf16 %v898_v27, %v897_v26  ;;  %v840_v34 = vadd.f32 %v2457_v28, %v839_v29 }
 0x2ee   :  { %v1834_v36 = vpop.f32.mrf.mxu0 }
 0x2ef   :  { %1897 = vmatmul.mubr.bf16.gmra.mxu1 %v916_v30  ;;  %v899_v35 = vmax.f32 %v840_v34, 0.0 }
 0x2f0   :  { %v842_v31 = vpop.f32.mrf.mxu0  ;;  %1900 = vmatprep.mubr.msk.bf16.mxu1 %vm2215_vm0, %v2214_v0 }
 0x2f1   :  { %v843_v32 = vadd.f32 %v2457_v28, %v842_v31 }
 0x2f2   :  { %v1835_v33 = vpop.f32.mrf.mxu0 }
 0x2f3   :  { %v900_v37 = vmax.f32 %v843_v32, 0.0 }
 0x2f4   :  { %v847_v38 = vpop.f32.mrf.mxu0 }
 0x2f5   :  { %v917_v39 = vpack.c.bf16 %v900_v37, %v899_v35  ;;  %v848_v41 = vadd.f32 %v2457_v28, %v847_v38 }
 0x2f6   :  { %v1838_v40 = vpop.f32.mrf.mxu0 }
 0x2f7   :  { %1901 = vmatmul.mubr.bf16.gmra.mxu1 %v917_v39  ;;  %v901_v45 = vmax.f32 %v848_v41, 0.0 }
 0x2f8   :  { %v850_v42 = vpop.f32.mrf.mxu0  ;;  %1904 = vmatprep.mubr.msk.bf16.mxu1 %vm2215_vm0, %v2214_v0 }
 0x2f9   :  { %v851_v43 = vadd.f32 %v2457_v28, %v850_v42 }
 0x2fa   :  { %v1839_v44 = vpop.f32.mrf.mxu0 }
 0x2fb   :  { %v902_v46 = vmax.f32 %v851_v43, 0.0 }
 0x2fc   :  { %v855_v47 = vpop.f32.mrf.mxu0 }
 0x2fd   :  { %v918_v48 = vpack.c.bf16 %v902_v46, %v901_v45  ;;  %v856_v50 = vadd.f32 %v2457_v28, %v855_v47 }
 0x2fe   :  { %v1842_v49 = vpop.f32.mrf.mxu0 }
 0x2ff   :  { %1905 = vmatmul.mubr.bf16.gmra.mxu1 %v918_v48  ;;  %v903_v54 = vmax.f32 %v856_v50, 0.0 }
 0x300   :  { %v858_v51 = vpop.f32.mrf.mxu0  ;;  %1908 = vmatprep.mubr.msk.bf16.mxu1 %vm2215_vm0, %v2214_v0 }
 0x301   :  { %v859_v52 = vadd.f32 %v2457_v28, %v858_v51 }
 0x302   :  { %v1843_v53 = vpop.f32.mrf.mxu0 }
 0x303   :  { %v904_v55 = vmax.f32 %v859_v52, 0.0 }
 0x304   :  { %v863_v56 = vpop.f32.mrf.mxu0 }
 0x305   :  { %v919_v57 = vpack.c.bf16 %v904_v55, %v903_v54  ;;  %v864_v59 = vadd.f32 %v2457_v28, %v863_v56 }
 0x306   :  { %v1846_v58 = vpop.f32.mrf.mxu0 }
 0x307   :  { %1909 = vmatmul.mubr.bf16.gmra.mxu1 %v919_v57  ;;  %v905_v63 = vmax.f32 %v864_v59, 0.0 }
 0x308   :  { %v866_v60 = vpop.f32.mrf.mxu0  ;;  %1912 = vmatprep.mubr.msk.bf16.mxu1 %vm2215_vm0, %v2214_v0 }
 0x309   :  { %v867_v61 = vadd.f32 %v2457_v28, %v866_v60 }
 0x30a   :  { %v1847_v62 = vpop.f32.mrf.mxu0 }
 0x30b   :  { %v906_v1 = vmax.f32 %v867_v61, 0.0 }
 0x30c   :  { %v871_v2 = vpop.f32.mrf.mxu0 }
 0x30d   :  { %v920_v3 = vpack.c.bf16 %v906_v1, %v905_v63  ;;  %v872_v5 = vadd.f32 %v2457_v28, %v871_v2 }
 0x30e   :  { %v1850_v4 = vpop.f32.mrf.mxu0 }
 0x30f   :  { %1913 = vmatmul.mubr.bf16.gmra.mxu1 %v920_v3  ;;  %v907_v9 = vmax.f32 %v872_v5, 0.0 }
 0x310   :  { %v874_v6 = vpop.f32.mrf.mxu0  ;;  %1916 = vmatprep.mubr.msk.bf16.mxu1 %vm2215_vm0, %v2214_v0 }
 0x311   :  { %v875_v7 = vadd.f32 %v2457_v28, %v874_v6 }
 0x312   :  { %v1851_v8 = vpop.f32.mrf.mxu0 }
 0x313   :  { %v908_v10 = vmax.f32 %v875_v7, 0.0 }
 0x314   :  { %v879_v11 = vpop.f32.mrf.mxu0 }
 0x315   :  { %v921_v12 = vpack.c.bf16 %v908_v10, %v907_v9  ;;  %v880_v13 = vadd.f32 %v2457_v28, %v879_v11 }
 0x316   :  { %v1854_v14 = vpop.f32.mrf.mxu0 }
 0x317   :  { %v909_v15 = vmax.f32 %v880_v13, 0.0  ;;  %1917 = vmatmul.mubr.bf16.gmra.mxu1 %v921_v12 }
 0x318   :  { %v882_v16 = vpop.f32.mrf.mxu0  ;;  %1920 = vmatprep.mubr.msk.bf16.mxu1 %vm2215_vm0, %v2214_v0 }
 0x319   :  { %v922_v18 = vpack.c.bf16 %v909_v15, %v909_v15 }
 0x31a   :  { %v1855_v17 = vpop.f32.mrf.mxu0 }
 0x31f   :  { %1921 = vmatmul.mubr.bf16.gmra.mxu1 %v922_v18 }
 0x37f   :  { %v1026_v20 = vpop.f32.mrf.mxu1 }
 0x380   :  { %v1027_v21 = vadd.f32 %v2511_v19, %v1026_v20 }
 0x381   :  { %v1874_v22 = vpop.f32.mrf.mxu1 }
 0x382   :  { %v1128_v28 = vsub.f32 0.0, %v1027_v21 }
 0x383   :  { %v1029_v23 = vpop.f32.mrf.mxu1 }
 0x384   :  { %v1153_v24 = vmul.f32 1.442695, %v1128_v28  ;;  %v1030_v25 = vadd.f32 %v2511_v19, %v1029_v23 }
 0x385   :  { %v1875_v26 = vpop.f32.mrf.mxu1 }
 0x386   :  { %1979 = vpow2.f32 %v1153_v24  ;;  %v1129_v0 = vsub.f32 0.0, %v1030_v25 }
 0x387   :  { %v1034_v27 = vpop.f32.mrf.mxu1 }
 0x388   :  { %v1155_v29 = vmul.f32 1.442695, %v1129_v0  ;;  %v1035_v30 = vadd.f32 %v2511_v19, %v1034_v27 }
 0x389   :  { %v1878_v36 = vpop.f32.mrf.mxu1 }
 0x38a   :  { %1981 = vpow2.f32 %v1155_v29  ;;  %v1130_v34 = vsub.f32 0.0, %v1035_v30 }
 0x38b   :  { %v1037_v31 = vpop.f32.mrf.mxu1 }
 0x38c   :  { %v1157_v32 = vmul.f32 1.442695, %v1130_v34  ;;  %v1038_v33 = vadd.f32 %v2511_v19, %v1037_v31 }
 0x38d   :  { %v1879_v35 = vpop.f32.mrf.mxu1 }
 0x38e   :  { %1983 = vpow2.f32 %v1157_v32  ;;  %v1131_v37 = vsub.f32 0.0, %v1038_v33 }
 0x38f   :  { %v1042_v38 = vpop.f32.mrf.mxu1 }
 0x390   :  { %v1159_v39 = vmul.f32 1.442695, %v1131_v37  ;;  %v1043_v40 = vadd.f32 %v2511_v19, %v1042_v38 }
 0x391   :  { %v1882_v41 = vpop.f32.mrf.mxu1 }
 0x392   :  { %1985 = vpow2.f32 %v1159_v39  ;;  %v1132_v42 = vsub.f32 0.0, %v1043_v40 }
 0x393   :  { %v1980_v43 = vpop.eup %1979  ;;  %v1045_v44 = vpop.f32.mrf.mxu1 }
 0x394   :  { %v1161_v45 = vmul.f32 1.442695, %v1132_v42  ;;  %v1046_v46 = vadd.f32 %v2511_v19, %v1045_v44  ;;  %v1203_v47 = vadd.f32 1.0, %v1980_v43 }
 0x395   :  { %v1883_v48 = vpop.f32.mrf.mxu1 }
 0x396   :  { %v1133_v49 = vsub.f32 0.0, %v1046_v46  ;;  %1987 = vpow2.f32 %v1161_v45 }
 0x397   :  { %v1982_v50 = vpop.eup %1981  ;;  %v1050_v51 = vpop.f32.mrf.mxu1  ;;  %1989 = vrcp.f32 %v1203_v47 }
 0x398   :  { %v1204_v52 = vadd.f32 1.0, %v1982_v50  ;;  %v1163_v53 = vmul.f32 1.442695, %v1133_v49  ;;  %v1051_v54 = vadd.f32 %v2511_v19, %v1050_v51 }
 0x399   :  { %v1886_v55 = vpop.f32.mrf.mxu1 }
 0x39a   :  { %1991 = vrcp.f32 %v1204_v52  ;;  %v1134_v56 = vsub.f32 0.0, %v1051_v54 }
 0x39b   :  { %v1984_v57 = vpop.eup %1983  ;;  %1993 = vpow2.f32 %v1163_v53  ;;  %v1053_v58 = vpop.f32.mrf.mxu1 }
 0x39c   :  { %v1165_v59 = vmul.f32 1.442695, %v1134_v56  ;;  %v1054_v60 = vadd.f32 %v2511_v19, %v1053_v58  ;;  %v1205_v61 = vadd.f32 1.0, %v1984_v57 }
 0x39d   :  { %v1887_v62 = vpop.f32.mrf.mxu1 }
 0x39e   :  { %v1135_v63 = vsub.f32 0.0, %v1054_v60  ;;  %1995 = vpow2.f32 %v1165_v59 }
 0x39f   :  { %v1986_v1 = vpop.eup %1985  ;;  %v1058_v2 = vpop.f32.mrf.mxu1  ;;  %1997 = vrcp.f32 %v1205_v61 }
 0x3a0   :  { %v1206_v3 = vadd.f32 1.0, %v1986_v1  ;;  %v1167_v4 = vmul.f32 1.442695, %v1135_v63  ;;  %v1059_v5 = vadd.f32 %v2511_v19, %v1058_v2 }
 0x3a1   :  { %v1890_v6 = vpop.f32.mrf.mxu1 }
 0x3a2   :  { %1999 = vrcp.f32 %v1206_v3  ;;  %v1136_v7 = vsub.f32 0.0, %v1059_v5 }
 0x3a3   :  { %2001 = vpow2.f32 %v1167_v4  ;;  %v1061_v8 = vpop.f32.mrf.mxu1  ;;  %v1988_v9 = vpop.eup %1987 }
 0x3a4   :  { %v1169_v10 = vmul.f32 1.442695, %v1136_v7  ;;  %v1062_v11 = vadd.f32 %v2511_v19, %v1061_v8  ;;  %v1207_v12 = vadd.f32 1.0, %v1988_v9  ;;  %v1990_v14 = vpop.eup %1989 }
 0x3a5   :  { %v1891_v13 = vpop.f32.mrf.mxu1 }
 0x3a6   :  { %2003 = vpow2.f32 %v1169_v10  ;;  %v1137_v15 = vsub.f32 0.0, %v1062_v11 }
 0x3a7   :  { %v1992_v16 = vpop.eup %1991  ;;  %v1066_v17 = vpop.f32.mrf.mxu1  ;;  %2005 = vrcp.f32 %v1207_v12 }
 0x3a8   :  { %v1994_v18 = vpop.eup %1993  ;;  %v1500_v20 = vpack.c.bf16 %v1992_v16, %v1990_v14  ;;  %v1171_v21 = vmul.f32 1.442695, %v1137_v15  ;;  %v1067_v22 = vadd.f32 %v2511_v19, %v1066_v17 }
 0x3a9   :  { %v1208_v28 = vadd.f32 1.0, %v1994_v18  ;;  %v1894_v23 = vpop.f32.mrf.mxu1 }
 0x3aa   :  { %1501 = vst [vmem:[#allocation11] sm:$0xff] %v1500_v20   ;;  %2007 = vpow2.f32 %v1171_v21  ;;  %v1138_v24 = vsub.f32 0.0, %v1067_v22 }
 0x3ab   :  { %2009 = vrcp.f32 %v1208_v28  ;;  %v1069_v25 = vpop.f32.mrf.mxu1  ;;  %v1996_v26 = vpop.eup %1995 }
 0x3ac   :  { %v1173_v0 = vmul.f32 1.442695, %v1138_v24  ;;  %v1070_v27 = vadd.f32 %v2511_v19, %v1069_v25  ;;  %v1209_v29 = vadd.f32 1.0, %v1996_v26  ;;  %v1998_v36 = vpop.eup %1997 }
 0x3ad   :  { %v1895_v30 = vpop.f32.mrf.mxu1 }
 0x3ae   :  { %2011 = vpow2.f32 %v1173_v0  ;;  %v1139_v34 = vsub.f32 0.0, %v1070_v27 }
 0x3af   :  { %v2000_v31 = vpop.eup %1999  ;;  %v1074_v32 = vpop.f32.mrf.mxu1  ;;  %2013 = vrcp.f32 %v1209_v29 }
 0x3b0   :  { %v2002_v33 = vpop.eup %2001  ;;  %v1505_v35 = vpack.c.bf16 %v2000_v31, %v1998_v36  ;;  %v1175_v37 = vmul.f32 1.442695, %v1139_v34  ;;  %v1075_v38 = vadd.f32 %v2511_v19, %v1074_v32 }
 0x3b1   :  { %v1210_v39 = vadd.f32 1.0, %v2002_v33  ;;  %v1898_v40 = vpop.f32.mrf.mxu1 }
 0x3b2   :  { %1557 = vst [vmem:[#allocation11 + $0x8] sm:$0xff] %v1505_v35   ;;  %2015 = vpow2.f32 %v1175_v37  ;;  %v1140_v41 = vsub.f32 0.0, %v1075_v38 }
 0x3b3   :  { %v2004_v42 = vpop.eup %2003  ;;  %2017 = vrcp.f32 %v1210_v39  ;;  %v1077_v43 = vpop.f32.mrf.mxu1 }
 0x3b4   :  { %v1177_v44 = vmul.f32 1.442695, %v1140_v41  ;;  %v1078_v45 = vadd.f32 %v2511_v19, %v1077_v43  ;;  %v1211_v46 = vadd.f32 1.0, %v2004_v42  ;;  %v2006_v48 = vpop.eup %2005 }
 0x3b5   :  { %v1899_v47 = vpop.f32.mrf.mxu1 }
 0x3b6   :  { %v1141_v49 = vsub.f32 0.0, %v1078_v45  ;;  %2019 = vpow2.f32 %v1177_v44 }
 0x3b7   :  { %v2008_v50 = vpop.eup %2007  ;;  %v1082_v51 = vpop.f32.mrf.mxu1  ;;  %2021 = vrcp.f32 %v1211_v46 }
 0x3b8   :  { %v2010_v52 = vpop.eup %2009  ;;  %v1212_v53 = vadd.f32 1.0, %v2008_v50  ;;  %v1179_v54 = vmul.f32 1.442695, %v1141_v49  ;;  %v1083_v55 = vadd.f32 %v2511_v19, %v1082_v51 }
 0x3b9   :  { %v1510_v56 = vpack.c.bf16 %v2010_v52, %v2006_v48  ;;  %v1902_v57 = vpop.f32.mrf.mxu1 }
 0x3ba   :  { %2023 = vrcp.f32 %v1212_v53  ;;  %v1142_v58 = vsub.f32 0.0, %v1083_v55 }
 0x3bb   :  { %v2012_v59 = vpop.eup %2011  ;;  %1558 = vst [vmem:[#allocation11 + $0x10] sm:$0xff] %v1510_v56   ;;  %2025 = vpow2.f32 %v1179_v54  ;;  %v1085_v60 = vpop.f32.mrf.mxu1 }
 0x3bc   :  { %v1181_v61 = vmul.f32 1.442695, %v1142_v58  ;;  %v1086_v62 = vadd.f32 %v2511_v19, %v1085_v60  ;;  %v1213_v63 = vadd.f32 1.0, %v2012_v59  ;;  %v2014_v2 = vpop.eup %2013 }
 0x3bd   :  { %v1903_v1 = vpop.f32.mrf.mxu1 }
 0x3be   :  { %v1143_v3 = vsub.f32 0.0, %v1086_v62  ;;  %2027 = vpow2.f32 %v1181_v61 }
 0x3bf   :  { %v2016_v4 = vpop.eup %2015  ;;  %v1090_v5 = vpop.f32.mrf.mxu1  ;;  %2029 = vrcp.f32 %v1213_v63 }
 0x3c0   :  { %v2018_v6 = vpop.eup %2017  ;;  %v1214_v7 = vadd.f32 1.0, %v2016_v4  ;;  %v1183_v8 = vmul.f32 1.442695, %v1143_v3  ;;  %v1091_v9 = vadd.f32 %v2511_v19, %v1090_v5 }
 0x3c1   :  { %v1515_v10 = vpack.c.bf16 %v2018_v6, %v2014_v2  ;;  %v1906_v11 = vpop.f32.mrf.mxu1 }
 0x3c2   :  { %2031 = vrcp.f32 %v1214_v7  ;;  %v1144_v12 = vsub.f32 0.0, %v1091_v9 }
 0x3c3   :  { %1559 = vst [vmem:[#allocation11 + $0x18] sm:$0xff] %v1515_v10   ;;  %2033 = vpow2.f32 %v1183_v8  ;;  %v1093_v13 = vpop.f32.mrf.mxu1  ;;  %v2020_v14 = vpop.eup %2019 }
 0x3c4   :  { %v1185_v15 = vmul.f32 1.442695, %v1144_v12  ;;  %v1094_v16 = vadd.f32 %v2511_v19, %v1093_v13  ;;  %v1215_v17 = vadd.f32 1.0, %v2020_v14  ;;  %v2022_v20 = vpop.eup %2021 }
 0x3c5   :  { %v1907_v18 = vpop.f32.mrf.mxu1 }
 0x3c6   :  { %2035 = vpow2.f32 %v1185_v15  ;;  %v1145_v21 = vsub.f32 0.0, %v1094_v16 }
 0x3c7   :  { %v2024_v22 = vpop.eup %2023  ;;  %v1098_v28 = vpop.f32.mrf.mxu1  ;;  %2037 = vrcp.f32 %v1215_v17 }
 0x3c8   :  { %v2026_v23 = vpop.eup %2025  ;;  %v1520_v24 = vpack.c.bf16 %v2024_v22, %v2022_v20  ;;  %v1187_v25 = vmul.f32 1.442695, %v1145_v21  ;;  %v1099_v26 = vadd.f32 %v2511_v19, %v1098_v28 }
 0x3c9   :  { %v1216_v0 = vadd.f32 1.0, %v2026_v23  ;;  %v1910_v27 = vpop.f32.mrf.mxu1 }
 0x3ca   :  { %1560 = vst [vmem:[#allocation11 + $0x20] sm:$0xff] %v1520_v24   ;;  %2039 = vpow2.f32 %v1187_v25  ;;  %v1146_v29 = vsub.f32 0.0, %v1099_v26 }
 0x3cb   :  { %2041 = vrcp.f32 %v1216_v0  ;;  %v1101_v30 = vpop.f32.mrf.mxu1  ;;  %v2028_v36 = vpop.eup %2027 }
 0x3cc   :  { %v1189_v34 = vmul.f32 1.442695, %v1146_v29  ;;  %v1102_v31 = vadd.f32 %v2511_v19, %v1101_v30  ;;  %v1217_v32 = vadd.f32 1.0, %v2028_v36  ;;  %v2030_v35 = vpop.eup %2029 }
 0x3cd   :  { %v1911_v33 = vpop.f32.mrf.mxu1 }
 0x3ce   :  { %2043 = vpow2.f32 %v1189_v34  ;;  %v1147_v37 = vsub.f32 0.0, %v1102_v31 }
 0x3cf   :  { %v2032_v38 = vpop.eup %2031  ;;  %v1106_v39 = vpop.f32.mrf.mxu1  ;;  %2045 = vrcp.f32 %v1217_v32 }
 0x3d0   :  { %v2034_v40 = vpop.eup %2033  ;;  %v1525_v41 = vpack.c.bf16 %v2032_v38, %v2030_v35  ;;  %v1191_v42 = vmul.f32 1.442695, %v1147_v37  ;;  %v1107_v43 = vadd.f32 %v2511_v19, %v1106_v39 }
 0x3d1   :  { %v1218_v44 = vadd.f32 1.0, %v2034_v40  ;;  %v1914_v45 = vpop.f32.mrf.mxu1 }
 0x3d2   :  { %1561 = vst [vmem:[#allocation11 + $0x28] sm:$0xff] %v1525_v41   ;;  %2047 = vpow2.f32 %v1191_v42  ;;  %v1148_v46 = vsub.f32 0.0, %v1107_v43 }
 0x3d3   :  { %v2036_v47 = vpop.eup %2035  ;;  %2049 = vrcp.f32 %v1218_v44  ;;  %v1109_v48 = vpop.f32.mrf.mxu1 }
 0x3d4   :  { %v1193_v49 = vmul.f32 1.442695, %v1148_v46  ;;  %v1110_v50 = vadd.f32 %v2511_v19, %v1109_v48  ;;  %v1219_v51 = vadd.f32 1.0, %v2036_v47  ;;  %v2038_v53 = vpop.eup %2037 }
 0x3d5   :  { %v1915_v52 = vpop.f32.mrf.mxu1 }
 0x3d6   :  { %v1149_v54 = vsub.f32 0.0, %v1110_v50  ;;  %2051 = vpow2.f32 %v1193_v49 }
 0x3d7   :  { %v2040_v55 = vpop.eup %2039  ;;  %v1114_v56 = vpop.f32.mrf.mxu1  ;;  %2053 = vrcp.f32 %v1219_v51 }
 0x3d8   :  { %v2042_v57 = vpop.eup %2041  ;;  %v1220_v58 = vadd.f32 1.0, %v2040_v55  ;;  %v1195_v59 = vmul.f32 1.442695, %v1149_v54  ;;  %v1115_v60 = vadd.f32 %v2511_v19, %v1114_v56 }
 0x3d9   :  { %v1530_v61 = vpack.c.bf16 %v2042_v57, %v2038_v53  ;;  %v1918_v62 = vpop.f32.mrf.mxu1 }
 0x3da   :  { %2055 = vrcp.f32 %v1220_v58  ;;  %v1150_v63 = vsub.f32 0.0, %v1115_v60 }
 0x3db   :  { %v2044_v1 = vpop.eup %2043  ;;  %1562 = vst [vmem:[#allocation11 + $0x30] sm:$0xff] %v1530_v61   ;;  %2057 = vpow2.f32 %v1195_v59  ;;  %v1117_v2 = vpop.f32.mrf.mxu1 }
 0x3dc   :  { %v1197_v3 = vmul.f32 1.442695, %v1150_v63  ;;  %v1118_v4 = vadd.f32 %v2511_v19, %v1117_v2  ;;  %v1221_v5 = vadd.f32 1.0, %v2044_v1  ;;  %v2046_v7 = vpop.eup %2045 }
 0x3dd   :  { %v1919_v6 = vpop.f32.mrf.mxu1 }
 0x3de   :  { %v1151_v8 = vsub.f32 0.0, %v1118_v4  ;;  %2059 = vpow2.f32 %v1197_v3 }
 0x3df   :  { %v2048_v9 = vpop.eup %2047  ;;  %v1122_v10 = vpop.f32.mrf.mxu1  ;;  %2061 = vrcp.f32 %v1221_v5 }
 0x3e0   :  { %v2050_v11 = vpop.eup %2049  ;;  %v1222_v12 = vadd.f32 1.0, %v2048_v9  ;;  %v1199_v13 = vmul.f32 1.442695, %v1151_v8  ;;  %v1123_v14 = vadd.f32 %v2511_v19, %v1122_v10 }
 0x3e1   :  { %v1535_v15 = vpack.c.bf16 %v2050_v11, %v2046_v7  ;;  %v1922_v16 = vpop.f32.mrf.mxu1 }
 0x3e2   :  { %2063 = vrcp.f32 %v1222_v12  ;;  %v1152_v17 = vsub.f32 0.0, %v1123_v14 }
 0x3e3   :  { %1563 = vst [vmem:[#allocation11 + $0x38] sm:$0xff] %v1535_v15   ;;  %2065 = vpow2.f32 %v1199_v13  ;;  %v1125_v18 = vpop.f32.mrf.mxu1  ;;  %v2052_v20 = vpop.eup %2051 }
 0x3e4   :  { %v1201_v21 = vmul.f32 1.442695, %v1152_v17  ;;  %v2054_v28 = vpop.eup %2053  ;;  %v1223_v23 = vadd.f32 1.0, %v2052_v20 }
 0x3e5   :  { %v1923_v22 = vpop.f32.mrf.mxu1 }
 0x3e6   :  { %2067 = vpow2.f32 %v1201_v21 }
 0x3e7   :  { %v2056_v24 = vpop.eup %2055  ;;  %2069 = vrcp.f32 %v1223_v23 }
 0x3e8   :  { %v2058_v25 = vpop.eup %2057  ;;  %v1540_v26 = vpack.c.bf16 %v2056_v24, %v2054_v28 }
 0x3e9   :  { %v1224_v0 = vadd.f32 1.0, %v2058_v25 }
 0x3ea   :  { %1564 = vst [vmem:[#allocation11 + $0x40] sm:$0xff] %v1540_v26  }
 0x3eb   :  { %2071 = vrcp.f32 %v1224_v0  ;;  %v2060_v19 = vpop.eup %2059 }
 0x3ec   :  { %v2062_v27 = vpop.eup %2061  ;;  %v1225_v29 = vadd.f32 1.0, %v2060_v19 }
 0x3ee   :  { %2073 = vrcp.f32 %v1225_v29 }
 0x3ef   :  { %v2064_v30 = vpop.eup %2063 }
 0x3f0   :  { %v2066_v36 = vpop.eup %2065  ;;  %v1545_v34 = vpack.c.bf16 %v2064_v30, %v2062_v27 }
 0x3f1   :  { %v1226_v31 = vadd.f32 1.0, %v2066_v36 }
 0x3f2   :  { %1565 = vst [vmem:[#allocation11 + $0x48] sm:$0xff] %v1545_v34  }
 0x3f3   :  { %v2068_v32 = vpop.eup %2067  ;;  %2075 = vrcp.f32 %v1226_v31 }
 0x3f4   :  { %v1227_v33 = vadd.f32 1.0, %v2068_v32  ;;  %v2070_v35 = vpop.eup %2069 }
 0x3f6   :  { %2077 = vrcp.f32 %v1227_v33 }
 0x3f8   :  { %v2072_v37 = vpop.eup %2071 }
 0x3f9   :  { %v1550_v38 = vpack.c.bf16 %v2072_v37, %v2070_v35 }
 0x3fb   :  { %1566 = vst [vmem:[#allocation11 + $0x50] sm:$0xff] %v1550_v38   ;;  %v2074_v39 = vpop.eup %2073 }
 0x400   :  { %v2076_v40 = vpop.eup %2075 }
 0x401   :  { %v1555_v41 = vpack.c.bf16 %v2076_v40, %v2074_v39 }
 0x403   :  { %v2078_v42 = vpop.eup %2077  ;;  %1567 = vst [vmem:[#allocation11 + $0x58] sm:$0xff] %v1555_v41  }
 0x404   :  { %v1496_v43 = vpack.c.bf16 %v2078_v42, %v2078_v42 }
 0x406   :  { %1378 = vst [vmem:[#allocation11 + $0x60] sm:$0xf] %v1496_v43 }
 0x407   :  { %2190 = shalt.err (!%p2187_p1)
}
 0x408   :  { %1390 = dma.vmem_to_hbm [thread:$0]  %s1385_s29, 1600, %s2550_s6, [#allocation4], %s2209_s26, %s2209_s26, %s2210_s27  }
 0x409   :  { %2205 = dma.done.wait [#allocation4], 1600  }
 0x40a   :  { %2206 = vsyncadd [#allocation4], 4294965696 }
 0x40b   :  { %1394 = vsyncpa [#allocation3], 1 }
 0x40c   :  { %1395 = vsyncpa [#allocation6], 1 }
 0x40d   :  { %1396 = vsyncpa [#allocation9], 1 }
 0x40e   :  { %1397 = vsyncpa [#allocation4], 1 }

</bundles_post_ra>
